<compile_context>
chip_gen: v6e
topology: v6e:2x2x1
jax: 0.10.0
libtpu: 0.0.40
codegen_flags: <defaults>
</compile_context>

<pallas_src>
import math
from functools import partial

import numpy as np
import jax
import jax.numpy as jnp
from jax import lax
from jax.experimental import pallas as pl
from jax.experimental.pallas import tpu as pltpu


# -----------------------------------------------------------------------------
# Pallas kernel: one (batch, L-tile) per grid step.
# -----------------------------------------------------------------------------
def _residual_block_kernel(dilation, halo, seq_len,
                           x_ref, xl_ref, xr_ref, cond_ref, dproj_ref,
                           wfused_ref, bmid_ref, wout_ref, bout_ref,
                           res_ref, skip_ref,
                           ywin_ref, stk_ref):
    C = res_ref.shape[1]
    TL = res_ref.shape[2]
    H = halo
    d = dilation
    W = TL + 2 * H
    bf16 = jnp.bfloat16

    j = pl.program_id(1)

    x = x_ref[0]                                   # [C, TL]  f32 (raw audio tile)
    dproj = dproj_ref[0]                           # [C, 1]   f32

    # y = x + diffusion_proj over the halo-extended window [j*TL - H, (j+1)*TL + H).
    # Only the first tile and tiles whose window touches the (possibly ragged) right
    # edge need the zero-padding validity mask; interior tiles take the fast path.
    needs_mask = (j == 0) | ((j + 1) * TL + H > seq_len)

    @pl.when(jnp.logical_not(needs_mask))
    def _assemble_fast():
        ywin_ref[:, :H] = (xl_ref[0] + dproj).astype(bf16)
        ywin_ref[:, H:H + TL] = (x + dproj).astype(bf16)
        ywin_ref[:, H + TL:] = (xr_ref[0] + dproj).astype(bf16)

    @pl.when(needs_mask)
    def _assemble_masked():
        col = lax.broadcasted_iota(jnp.int32, (1, W), 1)
        gpos = j * TL - H + col                    # original sequence position
        # Exactly reproduces the Conv1d zero padding at the sequence edges and squashes
        # the garbage read through the clamped halo index_maps / the ragged tail.
        valid = ((gpos >= 0) & (gpos < seq_len)).astype(jnp.float32)   # [1, W]
        ywin_ref[:, :H] = ((xl_ref[0] + dproj) * valid[:, :H]).astype(bf16)
        ywin_ref[:, H:H + TL] = ((x + dproj) * valid[:, H:H + TL]).astype(bf16)
        ywin_ref[:, H + TL:] = ((xr_ref[0] + dproj) * valid[:, H + TL:]).astype(bf16)

    # K-stacked MXU operand: rows = [y(l-d) | y(l) | y(l+d) | cond(l)] -> [3C+n_mels, TL]
    stk_ref[0 * C:1 * C, :] = ywin_ref[:, H - d:H - d + TL]
    stk_ref[1 * C:2 * C, :] = ywin_ref[:, H:H + TL]
    stk_ref[2 * C:3 * C, :] = ywin_ref[:, H + d:H + d + TL]
    stk_ref[3 * C:, :] = cond_ref[0]               # bf16 conditioner tile

    # Fused (dilated conv, k=3, dilation=d) + (1x1 conditioner conv) in ONE bf16 GEMM:
    #   y2 = W_fused @ stacked + (b_dil + b_cond),  f32 accumulation.
    y2 = (jnp.dot(wfused_ref[...], stk_ref[...],
                  preferred_element_type=jnp.float32)
          + bmid_ref[...])                         # [2C, TL] f32

    gate = y2[:C, :]
    filt = y2[C:, :]
    # sigmoid(g) = 1 / (1 + exp(-g)): exp and approx reciprocal both run on the EUP.
    act = pl.reciprocal(1.0 + jnp.exp(-gate), approx=True) * jnp.tanh(filt)   # [C, TL]

    # 1x1 output projection.
    out = (jnp.dot(wout_ref[...], act.astype(bf16),
                   preferred_element_type=jnp.float32)
           + bout_ref[...])                        # [2C, TL] f32

    inv_sqrt2 = 0.7071067811865476
    res_ref[0] = ((x + out[:C, :]) * inv_sqrt2).astype(res_ref.dtype)
    skip_ref[0] = out[C:, :].astype(skip_ref.dtype)


# -----------------------------------------------------------------------------
# Wrapper: PyTorch NCL layout in/out; no transposes, L tiled with a halo.
# -----------------------------------------------------------------------------
def residual_block_pallas(x, diffusion_step, conditioner, params, dilation,
                          *, tile_l=2048):
    B, C, L = x.shape
    n_mels = conditioner.shape[1]
    f32, bf16 = jnp.float32, jnp.bfloat16

    def rup(v, m):
        return ((v + m - 1) // m) * m

    # Halo: >= dilation and a multiple of 128 so halo blocks / window stores stay
    # lane-aligned.
    H = max(128, rup(dilation, 128))
    K = 3 * C + n_mels

    # L tile: multiple of H, close to tile_l, at most the (H-padded) sequence length.
    TL = min(max(H, (max(tile_l, H) // H) * H), rup(L, H))

    # Shrink the tile until the double-buffered VMEM footprint fits a conservative
    # budget (v7x: 64 MiB physical VMEM per TC, 32 MiB scoped default).
    def tile_bytes(tl):
        stream = (C * tl * 4 + 2 * C * H * 4 + n_mels * tl * 2 + C * 4   # inputs
                  + C * tl * 4 + C * tl * 2)                             # outputs
        weights = 2 * C * K * 2 + 2 * C * C * 2 + 2 * (2 * C * 4)        # w_fused/w_out/biases
        scratch = C * (tl + 2 * H) * 2 + K * tl * 2                      # window + stacked
        return 2 * stream + 2 * weights + scratch

    VMEM_BUDGET = 28 * 1024 * 1024
    while TL > H and tile_bytes(TL) > VMEM_BUDGET:
        TL -= H

    # Megacore (v7x has 2 TensorCores): ensure >= 2 independent grid programs if possible.
    if B * ((L + TL - 1) // TL) < 2 and TL > H:
        TL = max(H, rup((L + 1) // 2, H))

    Lr = rup(L, TL)
    nL = Lr // TL

    if Lr != L:   # ragged tail: pad streamed inputs, crop outputs at the end
        x_in = jnp.pad(x, ((0, 0), (0, 0), (0, Lr - L)))
        cond_in = jnp.pad(conditioner, ((0, 0), (0, 0), (0, Lr - L)))
    else:
        x_in, cond_in = x, conditioner
    # Stream the conditioner in bf16 (in DiffWave it is reused across every residual
    # block and diffusion step, so the one-time cast amortizes upstream).
    cond_in = cond_in.astype(bf16)

    # Hoisted: diffusion projection (M=1 GEMM) done once per call, outside the kernel.
    dproj = (diffusion_step @ params["w_diff"].T + params["b_diff"]).astype(f32)
    dproj = dproj[:, :, None]                                          # [B, C, 1]

    # Fused conv weight: [2C, 3C + n_mels] = [tap(l-d) | tap(l) | tap(l+d) | cond 1x1].
    w_dil = params["w_dil"]                                            # [2C, C, 3]
    w_fused = jnp.concatenate(
        [w_dil[:, :, 0], w_dil[:, :, 1], w_dil[:, :, 2], params["w_cond"][:, :, 0]],
        axis=1).astype(bf16)                                           # [2C, 3C+n_mels]
    w_out_k = params["w_out"][:, :, 0].astype(bf16)                    # [2C, C]
    b_mid = (params["b_dil"] + params["b_cond"]).astype(f32).reshape(2 * C, 1)
    b_out = params["b_out"].astype(f32).reshape(2 * C, 1)

    bpt = TL // H                 # halo blocks per L tile
    last_halo = Lr // H - 1       # last valid halo-block index (for clamping)

    def rep(shape):               # weight/bias blocks: whole array, resident in VMEM
        return pl.BlockSpec(shape, lambda b, j: tuple(0 for _ in shape))

    grid_spec = pltpu.PrefetchScalarGridSpec(
        num_scalar_prefetch=0,
        grid=(B, nL),
        in_specs=[
            pl.BlockSpec((1, C, TL), lambda b, j: (b, 0, j)),                  # x centre
            pl.BlockSpec((1, C, H),
                         lambda b, j: (b, 0, jnp.maximum(j * bpt - 1, 0))),    # left halo
            pl.BlockSpec((1, C, H),
                         lambda b, j: (b, 0, jnp.minimum((j + 1) * bpt,
                                                         last_halo))),         # right halo
            pl.BlockSpec((1, n_mels, TL), lambda b, j: (b, 0, j)),             # conditioner
            pl.BlockSpec((1, C, 1), lambda b, j: (b, 0, 0)),                   # dproj
            rep((2 * C, K)),                                                   # fused conv W
            rep((2 * C, 1)),                                                   # b_dil+b_cond
            rep((2 * C, C)),                                                   # w_out
            rep((2 * C, 1)),                                                   # b_out
        ],
        out_specs=[
            pl.BlockSpec((1, C, TL), lambda b, j: (b, 0, j)),                  # residual
            pl.BlockSpec((1, C, TL), lambda b, j: (b, 0, j)),                  # skip
        ],
        scratch_shapes=[pltpu.VMEM((C, TL + 2 * H), bf16),                     # y window
                        pltpu.VMEM((K, TL), bf16)],                            # K-stacked op
    )

    # Ask for the actual footprint (+ headroom), not a blanket 48 MiB.
    vmem_limit = int(tile_bytes(TL)) + 8 * 1024 * 1024

    res, skip = pl.pallas_call(
        partial(_residual_block_kernel, dilation, H, L),
        out_shape=(jax.ShapeDtypeStruct((B, C, Lr), f32),
                   jax.ShapeDtypeStruct((B, C, Lr), bf16)),
        grid_spec=grid_spec,
        compiler_params=pltpu.CompilerParams(
            dimension_semantics=("parallel", "parallel"),
            vmem_limit_bytes=vmem_limit),
    )(x_in, x_in, x_in, cond_in, dproj,
      w_fused, b_mid, w_out_k, b_out)

    if Lr != L:
        res = res[:, :, :L]
        skip = skip[:, :, :L]
    return res, skip


# -----------------------------------------------------------------------------
# Pure-JAX f32 reference (mirrors the PyTorch module exactly, NCL layout).
# -----------------------------------------------------------------------------
def residual_block_reference(x, diffusion_step, conditioner, params, dilation):
    B, C, L = x.shape
    d = diffusion_step @ params["w_diff"].T + params["b_diff"]       # [B, C]
    y = x + d[:, :, None]

    dil = lax.conv_general_dilated(
        y, params["w_dil"], window_strides=(1,),
        padding=[(dilation, dilation)], rhs_dilation=(dilation,),
        dimension_numbers=("NCH", "OIH", "NCH"))
    dil = dil + params["b_dil"][None, :, None]

    cond = lax.conv_general_dilated(
        conditioner, params["w_cond"], window_strides=(1,),
        padding=[(0, 0)], dimension_numbers=("NCH", "OIH", "NCH"))
    cond = cond + params["b_cond"][None, :, None]

    y = dil + cond
    gate, filt = y[:, :C, :], y[:, C:, :]
    y = jax.nn.sigmoid(gate) * jnp.tanh(filt)

    out = lax.conv_general_dilated(
        y, params["w_out"], window_strides=(1,),
        padding=[(0, 0)], dimension_numbers=("NCH", "OIH", "NCH"))
    out = out + params["b_out"][None, :, None]

    residual, skip = out[:, :C, :], out[:, C:, :]
    return (x + residual) / math.sqrt(2.0), skip


# -----------------------------------------------------------------------------
# Deterministic parameter init (shapes follow ResidualBlock.__init__).
# -----------------------------------------------------------------------------
def init_params(key, n_mels, C):
    ks = jax.random.split(key, 8)

    def kaiming(k, shape, fan_in):
        return jax.random.normal(k, shape, jnp.float32) * math.sqrt(2.0 / fan_in)

    def uniform(k, shape, fan_in):
        bound = 1.0 / math.sqrt(fan_in)
        return jax.random.uniform(k, shape, jnp.float32, -bound, bound)

    return {
        # dilated_conv: Conv1d(C, 2C, 3)  weight [2C, C, 3]
        "w_dil": kaiming(ks[0], (2 * C, C, 3), C * 3),
        "b_dil": uniform(ks[1], (2 * C,), C * 3),
        # diffusion_projection: Linear(512, C)  weight [C, 512]
        "w_diff": uniform(ks[2], (C, 512), 512),
        "b_diff": uniform(ks[3], (C,), 512),
        # conditioner_projection: Conv1d(n_mels, 2C, 1)  weight [2C, n_mels, 1]
        "w_cond": kaiming(ks[4], (2 * C, n_mels, 1), n_mels),
        "b_cond": uniform(ks[5], (2 * C,), n_mels),
        # output_projection: Conv1d(C, 2C, 1)  weight [2C, C, 1]
        "w_out": kaiming(ks[6], (2 * C, C, 1), C),
        "b_out": uniform(ks[7], (2 * C,), C),
    }


if __name__ == "__main__":
    B, C, L = 2, 32, 1000          # small; L deliberately NOT a multiple of the tile
    n_mels = 16
    dilation = 4

    key = jax.random.PRNGKey(0)
    kx, kd, kc, kp = jax.random.split(key, 4)

    x = jax.random.normal(kx, (B, C, L), jnp.float32)              # audio, NCL
    diffusion_step = jax.random.normal(kd, (B, 512), jnp.float32)  # diffusion embedding
    conditioner = jax.random.normal(kc, (B, n_mels, L), jnp.float32)

    params = init_params(kp, n_mels, C)

    # tile_l=256 keeps this test tiny while exercising interior (unmasked) tiles, edge
    # tiles and the ragged tail; the production default is tile_l=2048.
    res, skip = residual_block_pallas(x, diffusion_step, conditioner, params,
                                      dilation, tile_l=256)
    res, skip = jax.block_until_ready((res, skip))

    res_ref, skip_ref = residual_block_reference(x, diffusion_step, conditioner,
                                                 params, dilation)

    assert res.shape == (B, C, L) and skip.shape == (B, C, L)
    # bf16 MXU operands, bf16 skip output and the approx EUP reciprocal vs f32 reference
    # -> loose tolerance.
    np.testing.assert_allclose(np.asarray(res), np.asarray(res_ref),
                               rtol=5e-2, atol=5e-2)
    np.testing.assert_allclose(np.asarray(skip.astype(jnp.float32)),
                               np.asarray(skip_ref), rtol=5e-2, atol=5e-2)

    print("KERNEL_OK")
</pallas_src>

<mosaic_0001>
module attributes {stable_mosaic.version = 11 : i64} {
  func.func @_residual_block_kernel(%arg0: i32, %arg1: i32, %arg2: memref<1x32x256xf32, #tpu.memory_space<vmem>>, %arg3: memref<1x32x128xf32, #tpu.memory_space<vmem>>, %arg4: memref<1x32x128xf32, #tpu.memory_space<vmem>>, %arg5: memref<1x16x256xbf16, #tpu.memory_space<vmem>>, %arg6: memref<1x32x1xf32, #tpu.memory_space<vmem>>, %arg7: memref<64x112xbf16, #tpu.memory_space<vmem>>, %arg8: memref<64x1xf32, #tpu.memory_space<vmem>>, %arg9: memref<64x32xbf16, #tpu.memory_space<vmem>>, %arg10: memref<64x1xf32, #tpu.memory_space<vmem>>, %arg11: memref<1x32x256xf32, #tpu.memory_space<vmem>>, %arg12: memref<1x32x256xbf16, #tpu.memory_space<vmem>>, %arg13: memref<32x512xbf16, #tpu.memory_space<vmem>>, %arg14: memref<112x256xbf16, #tpu.memory_space<vmem>>) attributes {dimension_semantics = [#tpu.dimension_semantics<parallel>, #tpu.dimension_semantics<parallel>], iteration_bounds = array<i64: 2, 4>, scalar_prefetch = 0 : i64, scratch_operands = 2 : i64, tpu.core_type = #tpu.core_type<tc>, window_params = [{transform_indices = @transform_0, window_bounds = array<i64: 1, 32, 256>}, {transform_indices = @transform_1, window_bounds = array<i64: 1, 32, 128>}, {transform_indices = @transform_2, window_bounds = array<i64: 1, 32, 128>}, {transform_indices = @transform_3, window_bounds = array<i64: 1, 16, 256>}, {transform_indices = @transform_4, window_bounds = array<i64: 1, 32, 1>}, {pipeline_mode = #tpu.pipeline_mode<synchronous>, transform_indices = @transform_5, window_bounds = array<i64: 64, 112>}, {pipeline_mode = #tpu.pipeline_mode<synchronous>, transform_indices = @transform_6, window_bounds = array<i64: 64, 1>}, {pipeline_mode = #tpu.pipeline_mode<synchronous>, transform_indices = @transform_7, window_bounds = array<i64: 64, 32>}, {pipeline_mode = #tpu.pipeline_mode<synchronous>, transform_indices = @transform_8, window_bounds = array<i64: 64, 1>}, {transform_indices = @transform_9, window_bounds = array<i64: 1, 32, 256>}, {transform_indices = @transform_10, window_bounds = array<i64: 1, 32, 256>}]} {
    %c0 = arith.constant 0 : index
    %c0_0 = arith.constant 0 : index
    %c0_1 = arith.constant 0 : index
    %0 = vector.load %arg2[%c0, %c0_0, %c0_1] : memref<1x32x256xf32, #tpu.memory_space<vmem>>, vector<1x32x256xf32>
    %1 = vector.shape_cast %0 : vector<1x32x256xf32> to vector<32x256xf32>
    %c0_2 = arith.constant 0 : index
    %c0_3 = arith.constant 0 : index
    %c0_4 = arith.constant 0 : index
    %2 = vector.load %arg6[%c0_2, %c0_3, %c0_4] : memref<1x32x1xf32, #tpu.memory_space<vmem>>, vector<1x32x1xf32>
    %3 = vector.shape_cast %2 : vector<1x32x1xf32> to vector<32x1xf32>
    %c0_i32 = arith.constant 0 : i32
    %4 = arith.cmpi eq, %arg1, %c0_i32 : i32
    %c1_i32 = arith.constant 1 : i32
    %5 = arith.addi %arg1, %c1_i32 : i32
    %c256_i32 = arith.constant 256 : i32
    %6 = arith.muli %5, %c256_i32 : i32
    %c128_i32 = arith.constant 128 : i32
    %7 = arith.addi %6, %c128_i32 : i32
    %c1000_i32 = arith.constant 1000 : i32
    %8 = arith.cmpi sgt, %7, %c1000_i32 : i32
    %9 = arith.ori %4, %8 : i1
    %true = arith.constant true
    %10 = arith.xori %9, %true : i1
    %11 = arith.extui %10 : i1 to i32
    %c0_i32_5 = arith.constant 0 : i32
    %12 = arith.cmpi ne, %11, %c0_i32_5 : i32
    scf.if %12 {
      %c0_38 = arith.constant 0 : index
      %c0_39 = arith.constant 0 : index
      %c0_40 = arith.constant 0 : index
      %58 = vector.load %arg3[%c0_38, %c0_39, %c0_40] : memref<1x32x128xf32, #tpu.memory_space<vmem>>, vector<1x32x128xf32>
      %59 = vector.shape_cast %58 : vector<1x32x128xf32> to vector<32x128xf32>
      %60 = vector.broadcast %3 : vector<32x1xf32> to vector<32x128xf32>
      %61 = arith.addf %59, %60 : vector<32x128xf32>
      %62 = arith.truncf %61 : vector<32x128xf32> to vector<32x128xbf16>
      %c0_41 = arith.constant 0 : index
      %c0_42 = arith.constant 0 : index
      %63 = vector.load %arg13[%c0_41, %c0_42] : memref<32x512xbf16, #tpu.memory_space<vmem>>, vector<32x128xbf16>
      tpu.vector_store %arg13[%c0_41, %c0_42], %62 {strides = array<i32>} : memref<32x512xbf16, #tpu.memory_space<vmem>>, vector<32x128xbf16>,
      %64 = vector.broadcast %3 : vector<32x1xf32> to vector<32x256xf32>
      %65 = arith.addf %1, %64 : vector<32x256xf32>
      %66 = arith.truncf %65 : vector<32x256xf32> to vector<32x256xbf16>
      %c0_43 = arith.constant 0 : index
      %c128_44 = arith.constant 128 : index
      %67 = vector.load %arg13[%c0_43, %c128_44] : memref<32x512xbf16, #tpu.memory_space<vmem>>, vector<32x256xbf16>
      tpu.vector_store %arg13[%c0_43, %c128_44], %66 {strides = array<i32>} : memref<32x512xbf16, #tpu.memory_space<vmem>>, vector<32x256xbf16>,
      %c0_45 = arith.constant 0 : index
      %c0_46 = arith.constant 0 : index
      %c0_47 = arith.constant 0 : index
      %68 = vector.load %arg4[%c0_45, %c0_46, %c0_47] : memref<1x32x128xf32, #tpu.memory_space<vmem>>, vector<1x32x128xf32>
      %69 = vector.shape_cast %68 : vector<1x32x128xf32> to vector<32x128xf32>
      %70 = vector.broadcast %3 : vector<32x1xf32> to vector<32x128xf32>
      %71 = arith.addf %69, %70 : vector<32x128xf32>
      %72 = arith.truncf %71 : vector<32x128xf32> to vector<32x128xbf16>
      %c0_48 = arith.constant 0 : index
      %c384 = arith.constant 384 : index
      %73 = vector.load %arg13[%c0_48, %c384] : memref<32x512xbf16, #tpu.memory_space<vmem>>, vector<32x128xbf16>
      tpu.vector_store %arg13[%c0_48, %c384], %72 {strides = array<i32>} : memref<32x512xbf16, #tpu.memory_space<vmem>>, vector<32x128xbf16>,
    } else {
    }
    %13 = arith.extui %9 : i1 to i32
    %c0_i32_6 = arith.constant 0 : i32
    %14 = arith.cmpi ne, %13, %c0_i32_6 : i32
    scf.if %14 {
      %58 = tpu.iota {dimensions = array<i32: 1>} : vector<1x512xi32>
      %c256_i32_38 = arith.constant 256 : i32
      %59 = arith.muli %arg1, %c256_i32_38 : i32
      %c128_i32_39 = arith.constant 128 : i32
      %60 = arith.subi %59, %c128_i32_39 : i32
      %61 = vector.broadcast %60 : i32 to vector<1x512xi32>
      %62 = arith.addi %61, %58 : vector<1x512xi32>
      %c0_i32_40 = arith.constant 0 : i32
      %63 = vector.broadcast %c0_i32_40 : i32 to vector<1x512xi32>
      %64 = arith.cmpi sge, %62, %63 : vector<1x512xi32>
      %c1000_i32_41 = arith.constant 1000 : i32
      %65 = vector.broadcast %c1000_i32_41 : i32 to vector<1x512xi32>
      %66 = arith.cmpi slt, %62, %65 : vector<1x512xi32>
      %67 = arith.andi %64, %66 : vector<1x512xi1>
      %68 = arith.extui %67 : vector<1x512xi1> to vector<1x512xi32>
      %69 = arith.sitofp %68 : vector<1x512xi32> to vector<1x512xf32>
      %c0_42 = arith.constant 0 : index
      %c0_43 = arith.constant 0 : index
      %c0_44 = arith.constant 0 : index
      %70 = vector.load %arg3[%c0_42, %c0_43, %c0_44] : memref<1x32x128xf32, #tpu.memory_space<vmem>>, vector<1x32x128xf32>
      %71 = vector.shape_cast %70 : vector<1x32x128xf32> to vector<32x128xf32>
      %72 = vector.broadcast %3 : vector<32x1xf32> to vector<32x128xf32>
      %73 = arith.addf %71, %72 : vector<32x128xf32>
      %74 = vector.extract_strided_slice %69 {offsets = [0, 0], sizes = [1, 128], strides = [1, 1]} : vector<1x512xf32> to vector<1x128xf32>
      %75 = vector.broadcast %74 : vector<1x128xf32> to vector<32x128xf32>
      %76 = arith.mulf %73, %75 : vector<32x128xf32>
      %77 = arith.truncf %76 : vector<32x128xf32> to vector<32x128xbf16>
      %c0_45 = arith.constant 0 : index
      %c0_46 = arith.constant 0 : index
      %78 = vector.load %arg13[%c0_45, %c0_46] : memref<32x512xbf16, #tpu.memory_space<vmem>>, vector<32x128xbf16>
      tpu.vector_store %arg13[%c0_45, %c0_46], %77 {strides = array<i32>} : memref<32x512xbf16, #tpu.memory_space<vmem>>, vector<32x128xbf16>,
      %79 = vector.broadcast %3 : vector<32x1xf32> to vector<32x256xf32>
      %80 = arith.addf %1, %79 : vector<32x256xf32>
      %81 = vector.extract_strided_slice %69 {offsets = [0, 128], sizes = [1, 256], strides = [1, 1]} : vector<1x512xf32> to vector<1x256xf32>
      %82 = vector.broadcast %81 : vector<1x256xf32> to vector<32x256xf32>
      %83 = arith.mulf %80, %82 : vector<32x256xf32>
      %84 = arith.truncf %83 : vector<32x256xf32> to vector<32x256xbf16>
      %c0_47 = arith.constant 0 : index
      %c128_48 = arith.constant 128 : index
      %85 = vector.load %arg13[%c0_47, %c128_48] : memref<32x512xbf16, #tpu.memory_space<vmem>>, vector<32x256xbf16>
      tpu.vector_store %arg13[%c0_47, %c128_48], %84 {strides = array<i32>} : memref<32x512xbf16, #tpu.memory_space<vmem>>, vector<32x256xbf16>,
      %c0_49 = arith.constant 0 : index
      %c0_50 = arith.constant 0 : index
      %c0_51 = arith.constant 0 : index
      %86 = vector.load %arg4[%c0_49, %c0_50, %c0_51] : memref<1x32x128xf32, #tpu.memory_space<vmem>>, vector<1x32x128xf32>
      %87 = vector.shape_cast %86 : vector<1x32x128xf32> to vector<32x128xf32>
      %88 = vector.broadcast %3 : vector<32x1xf32> to vector<32x128xf32>
      %89 = arith.addf %87, %88 : vector<32x128xf32>
      %90 = vector.extract_strided_slice %69 {offsets = [0, 384], sizes = [1, 128], strides = [1, 1]} : vector<1x512xf32> to vector<1x128xf32>
      %91 = vector.broadcast %90 : vector<1x128xf32> to vector<32x128xf32>
      %92 = arith.mulf %89, %91 : vector<32x128xf32>
      %93 = arith.truncf %92 : vector<32x128xf32> to vector<32x128xbf16>
      %c0_52 = arith.constant 0 : index
      %c384 = arith.constant 384 : index
      %94 = vector.load %arg13[%c0_52, %c384] : memref<32x512xbf16, #tpu.memory_space<vmem>>, vector<32x128xbf16>
      tpu.vector_store %arg13[%c0_52, %c384], %93 {strides = array<i32>} : memref<32x512xbf16, #tpu.memory_space<vmem>>, vector<32x128xbf16>,
    } else {
    }
    %c0_7 = arith.constant 0 : index
    %c124 = arith.constant 124 : index
    %15 = vector.load %arg13[%c0_7, %c124] : memref<32x512xbf16, #tpu.memory_space<vmem>>, vector<32x256xbf16>
    %c0_8 = arith.constant 0 : index
    %c0_9 = arith.constant 0 : index
    %16 = vector.load %arg14[%c0_8, %c0_9] : memref<112x256xbf16, #tpu.memory_space<vmem>>, vector<32x256xbf16>
    tpu.vector_store %arg14[%c0_8, %c0_9], %15 {strides = array<i32>} : memref<112x256xbf16, #tpu.memory_space<vmem>>, vector<32x256xbf16>,
    %c0_10 = arith.constant 0 : index
    %c128 = arith.constant 128 : index
    %17 = vector.load %arg13[%c0_10, %c128] : memref<32x512xbf16, #tpu.memory_space<vmem>>, vector<32x256xbf16>
    %c32 = arith.constant 32 : index
    %c0_11 = arith.constant 0 : index
    %18 = vector.load %arg14[%c32, %c0_11] : memref<112x256xbf16, #tpu.memory_space<vmem>>, vector<32x256xbf16>
    tpu.vector_store %arg14[%c32, %c0_11], %17 {strides = array<i32>} : memref<112x256xbf16, #tpu.memory_space<vmem>>, vector<32x256xbf16>,
    %c0_12 = arith.constant 0 : index
    %c132 = arith.constant 132 : index
    %19 = vector.load %arg13[%c0_12, %c132] : memref<32x512xbf16, #tpu.memory_space<vmem>>, vector<32x256xbf16>
    %c64 = arith.constant 64 : index
    %c0_13 = arith.constant 0 : index
    %20 = vector.load %arg14[%c64, %c0_13] : memref<112x256xbf16, #tpu.memory_space<vmem>>, vector<32x256xbf16>
    tpu.vector_store %arg14[%c64, %c0_13], %19 {strides = array<i32>} : memref<112x256xbf16, #tpu.memory_space<vmem>>, vector<32x256xbf16>,
    %c0_14 = arith.constant 0 : index
    %c0_15 = arith.constant 0 : index
    %c0_16 = arith.constant 0 : index
    %21 = vector.load %arg5[%c0_14, %c0_15, %c0_16] : memref<1x16x256xbf16, #tpu.memory_space<vmem>>, vector<1x16x256xbf16>
    %22 = vector.shape_cast %21 : vector<1x16x256xbf16> to vector<16x256xbf16>
    %c96 = arith.constant 96 : index
    %c0_17 = arith.constant 0 : index
    %23 = vector.load %arg14[%c96, %c0_17] : memref<112x256xbf16, #tpu.memory_space<vmem>>, vector<16x256xbf16>
    tpu.vector_store %arg14[%c96, %c0_17], %22 {strides = array<i32>} : memref<112x256xbf16, #tpu.memory_space<vmem>>, vector<16x256xbf16>,
    %c0_18 = arith.constant 0 : index
    %c0_19 = arith.constant 0 : index
    %24 = vector.load %arg7[%c0_18, %c0_19] : memref<64x112xbf16, #tpu.memory_space<vmem>>, vector<64x112xbf16>
    %c0_20 = arith.constant 0 : index
    %c0_21 = arith.constant 0 : index
    %25 = vector.load %arg14[%c0_20, %c0_21] : memref<112x256xbf16, #tpu.memory_space<vmem>>, vector<112x256xbf16>
    %cst = arith.constant dense<0.000000e+00> : vector<64x256xf32>
    %26 = tpu.matmul %24, %25, %cst {dimension_numbers = #tpu.dot_dimension_numbers<[1], [0], [0], [1], [0, 0, 1, 1], [], []>} : vector<64x112xbf16>, vector<112x256xbf16>, vector<64x256xf32> -> vector<64x256xf32>
    %c0_22 = arith.constant 0 : index
    %c0_23 = arith.constant 0 : index
    %27 = vector.load %arg8[%c0_22, %c0_23] : memref<64x1xf32, #tpu.memory_space<vmem>>, vector<64x1xf32>
    %28 = vector.broadcast %27 : vector<64x1xf32> to vector<64x256xf32>
    %29 = arith.addf %26, %28 : vector<64x256xf32>
    %30 = vector.extract_strided_slice %29 {offsets = [0, 0], sizes = [32, 256], strides = [1, 1]} : vector<64x256xf32> to vector<32x256xf32>
    %31 = vector.extract_strided_slice %29 {offsets = [32, 0], sizes = [32, 256], strides = [1, 1]} : vector<64x256xf32> to vector<32x256xf32>
    %cst_24 = arith.constant 0.000000e+00 : f32
    %32 = vector.broadcast %cst_24 : f32 to vector<32x256xf32>
    %33 = arith.subf %32, %30 : vector<32x256xf32>
    %34 = math.exp %33 : vector<32x256xf32>
    %cst_25 = arith.constant 1.000000e+00 : f32
    %35 = vector.broadcast %cst_25 : f32 to vector<32x256xf32>
    %36 = arith.addf %35, %34 : vector<32x256xf32>
    %37 = tpu.reciprocal %36 {approx = true} : vector<32x256xf32> -> vector<32x256xf32>
    %38 = math.tanh %31 : vector<32x256xf32>
    %39 = arith.mulf %37, %38 : vector<32x256xf32>
    %c0_26 = arith.constant 0 : index
    %c0_27 = arith.constant 0 : index
    %40 = vector.load %arg9[%c0_26, %c0_27] : memref<64x32xbf16, #tpu.memory_space<vmem>>, vector<64x32xbf16>
    %41 = arith.truncf %39 : vector<32x256xf32> to vector<32x256xbf16>
    %cst_28 = arith.constant dense<0.000000e+00> : vector<64x256xf32>
    %42 = tpu.matmul %40, %41, %cst_28 {dimension_numbers = #tpu.dot_dimension_numbers<[1], [0], [0], [1], [0, 0, 1, 1], [], []>} : vector<64x32xbf16>, vector<32x256xbf16>, vector<64x256xf32> -> vector<64x256xf32>
    %c0_29 = arith.constant 0 : index
    %c0_30 = arith.constant 0 : index
    %43 = vector.load %arg10[%c0_29, %c0_30] : memref<64x1xf32, #tpu.memory_space<vmem>>, vector<64x1xf32>
    %44 = vector.broadcast %43 : vector<64x1xf32> to vector<64x256xf32>
    %45 = arith.addf %42, %44 : vector<64x256xf32>
    %46 = vector.extract_strided_slice %45 {offsets = [0, 0], sizes = [32, 256], strides = [1, 1]} : vector<64x256xf32> to vector<32x256xf32>
    %47 = arith.addf %1, %46 : vector<32x256xf32>
    %cst_31 = arith.constant 0.707106769 : f32
    %48 = vector.broadcast %cst_31 : f32 to vector<32x256xf32>
    %49 = arith.mulf %47, %48 : vector<32x256xf32>
    %c0_32 = arith.constant 0 : index
    %c0_33 = arith.constant 0 : index
    %c0_34 = arith.constant 0 : index
    %50 = vector.load %arg11[%c0_32, %c0_33, %c0_34] : memref<1x32x256xf32, #tpu.memory_space<vmem>>, vector<1x32x256xf32>
    %51 = vector.shape_cast %50 : vector<1x32x256xf32> to vector<32x256xf32>
    %52 = vector.shape_cast %49 : vector<32x256xf32> to vector<1x32x256xf32>
    tpu.vector_store %arg11[%c0_32, %c0_33, %c0_34], %52 {strides = array<i32>} : memref<1x32x256xf32, #tpu.memory_space<vmem>>, vector<1x32x256xf32>,
    %53 = vector.extract_strided_slice %45 {offsets = [32, 0], sizes = [32, 256], strides = [1, 1]} : vector<64x256xf32> to vector<32x256xf32>
    %54 = arith.truncf %53 : vector<32x256xf32> to vector<32x256xbf16>
    %c0_35 = arith.constant 0 : index
    %c0_36 = arith.constant 0 : index
    %c0_37 = arith.constant 0 : index
    %55 = vector.load %arg12[%c0_35, %c0_36, %c0_37] : memref<1x32x256xbf16, #tpu.memory_space<vmem>>, vector<1x32x256xbf16>
    %56 = vector.shape_cast %55 : vector<1x32x256xbf16> to vector<32x256xbf16>
    %57 = vector.shape_cast %54 : vector<32x256xbf16> to vector<1x32x256xbf16>
    tpu.vector_store %arg12[%c0_35, %c0_36, %c0_37], %57 {strides = array<i32>} : memref<1x32x256xbf16, #tpu.memory_space<vmem>>, vector<1x32x256xbf16>,
    return
  }
  func.func @transform_0(%arg0: i32, %arg1: i32) -> (i32, i32, i32) {
    %c0_i32 = arith.constant 0 : i32
    %c0_i32_0 = arith.constant 0 : i32
    return %arg0, %c0_i32, %arg1 : i32, i32, i32
  }
  func.func @transform_1(%arg0: i32, %arg1: i32) -> (i32, i32, i32) {
    %c2_i32 = arith.constant 2 : i32
    %0 = arith.muli %arg1, %c2_i32 : i32
    %c1_i32 = arith.constant 1 : i32
    %1 = arith.subi %0, %c1_i32 : i32
    %c0_i32 = arith.constant 0 : i32
    %2 = arith.maxsi %1, %c0_i32 : i32
    %c0_i32_0 = arith.constant 0 : i32
    %c0_i32_1 = arith.constant 0 : i32
    return %arg0, %c0_i32_0, %2 : i32, i32, i32
  }
  func.func @transform_2(%arg0: i32, %arg1: i32) -> (i32, i32, i32) {
    %c1_i32 = arith.constant 1 : i32
    %0 = arith.addi %arg1, %c1_i32 : i32
    %c2_i32 = arith.constant 2 : i32
    %1 = arith.muli %0, %c2_i32 : i32
    %c7_i32 = arith.constant 7 : i32
    %2 = arith.minsi %1, %c7_i32 : i32
    %c0_i32 = arith.constant 0 : i32
    %c0_i32_0 = arith.constant 0 : i32
    return %arg0, %c0_i32, %2 : i32, i32, i32
  }
  func.func @transform_3(%arg0: i32, %arg1: i32) -> (i32, i32, i32) {
    %c0_i32 = arith.constant 0 : i32
    %c0_i32_0 = arith.constant 0 : i32
    return %arg0, %c0_i32, %arg1 : i32, i32, i32
  }
  func.func @transform_4(%arg0: i32, %arg1: i32) -> (i32, i32, i32) {
    %c0_i32 = arith.constant 0 : i32
    %c0_i32_0 = arith.constant 0 : i32
    %c0_i32_1 = arith.constant 0 : i32
    return %arg0, %c0_i32, %c0_i32_0 : i32, i32, i32
  }
  func.func @transform_5(%arg0: i32, %arg1: i32) -> (i32, i32) {
    %c0_i32 = arith.constant 0 : i32
    %c0_i32_0 = arith.constant 0 : i32
    %c0_i32_1 = arith.constant 0 : i32
    return %c0_i32, %c0_i32_0 : i32, i32
  }
  func.func @transform_6(%arg0: i32, %arg1: i32) -> (i32, i32) {
    %c0_i32 = arith.constant 0 : i32
    %c0_i32_0 = arith.constant 0 : i32
    %c0_i32_1 = arith.constant 0 : i32
    return %c0_i32, %c0_i32_0 : i32, i32
  }
  func.func @transform_7(%arg0: i32, %arg1: i32) -> (i32, i32) {
    %c0_i32 = arith.constant 0 : i32
    %c0_i32_0 = arith.constant 0 : i32
    %c0_i32_1 = arith.constant 0 : i32
    return %c0_i32, %c0_i32_0 : i32, i32
  }
  func.func @transform_8(%arg0: i32, %arg1: i32) -> (i32, i32) {
    %c0_i32 = arith.constant 0 : i32
    %c0_i32_0 = arith.constant 0 : i32
    %c0_i32_1 = arith.constant 0 : i32
    return %c0_i32, %c0_i32_0 : i32, i32
  }
  func.func @transform_9(%arg0: i32, %arg1: i32) -> (i32, i32, i32) {
    %c0_i32 = arith.constant 0 : i32
    %c0_i32_0 = arith.constant 0 : i32
    return %arg0, %c0_i32, %arg1 : i32, i32, i32
  }
  func.func @transform_10(%arg0: i32, %arg1: i32) -> (i32, i32, i32) {
    %c0_i32 = arith.constant 0 : i32
    %c0_i32_0 = arith.constant 0 : i32
    return %arg0, %c0_i32, %arg1 : i32, i32, i32
  }
}

</mosaic_0001>

<bundles_post_ra>
// kernel: tpu_custom_call.1
= control target key start
LH: loop header
LB: loop body
LE: loop exit
PB: predicated region body
PF: predicated region fallthrough
CT: control target
= control target key end

     0   :  { %s3153_s0 = inlined_call_operand.hbm [shape: f32[2,32,1024], index: 0, kind: input, shape index: {}]   ;;  %s3154_s1 = inlined_call_operand.hbm [shape: f32[2,32,1024], index: 1, kind: input, shape index: {}]   ;;  %s3155_s2 = inlined_call_operand.hbm [shape: f32[2,32,1024], index: 2, kind: input, shape index: {}]   ;;  %s3156_s3 = inlined_call_operand.vmem [shape: bf16[2,16,1024], index: 3, kind: input, shape index: {}]   ;;  %s3157_s4 = inlined_call_operand.vmem [shape: f32[2,32,1], index: 4, kind: input, shape index: {}]   ;;  %s3158_s5 = inlined_call_operand.vmem [shape: bf16[64,112], index: 5, kind: input, shape index: {}]   ;;  %s3159_s6 = inlined_call_operand.vmem [shape: f32[64,1], index: 6, kind: input, shape index: {}]   ;;  %s3160_s7 = inlined_call_operand.vmem [shape: bf16[64,32], index: 7, kind: input, shape index: {}]   ;;  %s3161_s8 = inlined_call_operand.vmem [shape: f32[64,1], index: 8, kind: input, shape index: {}]   ;;  %s3162_s9 = inlined_call_operand.hbm [shape: f32[2,32,1024], index: 9, kind: output, shape index: {0}]   ;;  %s3163_s10 = inlined_call_operand.hbm [shape: bf16[2,32,1024], index: 10, kind: output, shape index: {1}]  }
   0x1   :  { %3197 = sst [smem:[#allocation39_spill]] %s3153_s0 }
   0x2   :  { %3198 = sst [smem:[#allocation40_spill]] %s3154_s1 }
   0x3   :  { %3199 = sst [smem:[#allocation41_spill]] %s3157_s4 }
   0x4   :  { %3200 = sst [smem:[#allocation42_spill]] %s3158_s5 }
   0x5   :  { %3201 = sst [smem:[#allocation43_spill]] %s3159_s6 }
   0x6   :  { %3202 = sst [smem:[#allocation44_spill]] %s3160_s7 }
   0x7   :  { %3203 = sst [smem:[#allocation45_spill]] %s3161_s8 }
   0x8   :  { %3204 = sst [smem:[#allocation46_spill]] %s3162_s9 }
   0x9   :  { %3205 = sst [smem:[#allocation47_spill]] %s3163_s10 }
   0xa   :  { %16 = vsyncpa [#allocation5], 0 }
   0xb   :  { %18 = vsyncpa [#allocation5 + $0x1], 0 }
   0xc   :  { %19 = vsyncpa [#allocation8], 0 }
   0xd   :  { %21 = vsyncpa [#allocation8 + $0x1], 0 }
   0xe   :  { %22 = vsyncpa [#allocation6], 0 }
   0xf   :  { %24 = vsyncpa [#allocation6 + $0x1], 0 }
  0x10   :  { %25 = vsyncpa [#allocation13], 0 }
  0x11   :  { %27 = vsyncpa [#allocation13 + $0x1], 0  ;;  %s2503_s13 = smov 0   ;;  %s2505_s14 = smov 0  }
  0x12   :  { %s2507_s15 = smov 0   ;;  %s2509_s16 = smov 0  }
  0x13   :  { %s2511_s17 = smov 0   ;;  %s2513_s18 = smov 0  }
  0x14   :  { %s2515_s19 = smov 0   ;;  %s2517_s20 = smov 0  }
  0x15   :  { %s2519_s21 = smov 0   ;;  %s2521_s22 = smov 0  }
  0x16   :  { %s2523_s23 = smov 0   ;;  %s2525_s24 = smov 0  }
  0x17   :  { %s2527_s25 = smov 0   ;;  %s2529_s26 = smov 0  }
  0x18 LB: > { %3206 = sst [smem:[#allocation19_spill]] %s2376_s14  ;;  %s2574_s27 = sadd.s32 4294967295, %s2424_s26   ;;  %s2424_s26 = sphi %s2529_s26, %s33_s26   ;;  %s2420_s25 = sphi %s2527_s25, %s3283_s25   ;;  %s2416_s24 = sphi %s2525_s24, %s3278_s24   ;;  %s2412_s23 = sphi %s2523_s23, %s3282_s23   ;;  %s2408_s22 = sphi %s2521_s22, %s3277_s22   ;;  %s2404_s21 = sphi %s2519_s21, %s3276_s21   ;;  %s2400_s20 = sphi %s2517_s20, %s3281_s20   ;;  %s2396_s19 = sphi %s2515_s19, %s3280_s19   ;;  %s2392_s18 = sphi %s2513_s18, %s3274_s18   ;;  %s2388_s17 = sphi %s2511_s17, %s3273_s17   ;;  %s2384_s16 = sphi %s2509_s16, %s3272_s16   ;;  %s2380_s15 = sphi %s2507_s15, %s3271_s15   ;;  %s2376_s14 = sphi %s2505_s14, %s3270_s14   ;;  %s2372_s13 = sphi %s2503_s13, %s3269_s13  }
  0x19   : > { %3207 = sst [smem:[#allocation20_spill]] %s2380_s15  ;;  %s42_s29 = sadd.s32 1, %s2416_s24 }
  0x1a   : > { %3208 = sst [smem:[#allocation21_spill]] %s2388_s17  ;;  %s45_s30 = sadd.s32 1, %s2420_s25 }
  0x1b   : > { %3209 = sst [smem:[#allocation22_spill]] %s2392_s18  ;;  %p43_p0 = scmp.ge.s32.totalorder %s42_s29, 4 }
  0x1c   : > { %3210 = sst [smem:[#allocation23_spill]] %s2396_s19  ;;  %s54_s11 = sadd.s32 1, %s2404_s21 }
  0x1d   : > { %3211 = sst [smem:[#allocation24_spill]] %s2404_s21  ;;  %p3176_p1 = scmp.ne.s32.totalorder %s2404_s21, %s2400_s20 }
  0x1e   : > { %3212 = sst [smem:[#allocation25_spill]] %s2408_s22  ;;  %p62_p2 = scmp.eq.s32.totalorder %s2424_s26, 0 }
  0x1f   : > { %3213 = sst [smem:[#allocation26_spill]] %s2412_s23  ;;  %s3285_s29 = smov (%p43_p0, %s42_s29), 0 }
  0x20   : > { %3214 = sst [smem:[#allocation27_spill]] %s2416_s24  ;;  %s3287_s30 = smov (!%p43_p0, %s45_s30), %s2420_s25 }
  0x21   : > { %3215 = sst [smem:[#allocation28_spill]] %s2574_s27  ;;  %s50_s12 = ssub.s32 %s2416_s24, %s3285_s29 }
  0x22   : > { %3216 = sst [smem:[#allocation29_spill]] %s3285_s29  ;;  %p2593_p3 = por %p62_p2, %p3176_p1 }
  0x23   : > { %p47_p4 = scmp.ge.s32.totalorder %s3287_s30, 2  ;;  %p3174_p5 = scmp.ne.s32.totalorder %s2400_s20, %s2396_s19 }
  0x24   : > { %p68_p6 = scmp.eq.s32.totalorder %s2574_s27, 0  ;;  %s2601_s10 = sshll.u32 %s2416_s24, 1 }
  0x25   : > { %s3289_s30 = smov (%p47_p4, %s3287_s30), 0  ;;  %s1803_s7 = sadd.s32 4294967295, %s2601_s10 }
  0x26   : > { %3218 = sst [smem:[#allocation30_spill]] %s3289_s30  ;;  %p2610_p7 = por %p68_p6, %p3174_p5 }
  0x27   : > { %s2617_s5 = ssub.s32 %s2420_s25, %s3289_s30  ;;  %p79_p8 = scmp.gt.s32.totalorder %s1803_s7, 0 }
  0x28   : > { %s3219_s9 = scalar_select %p2610_p7, 1, 0 }
  0x29   : > { %s51_s24 = sor.u32 %s50_s12, %s2617_s5  ;;  %s1804_s8 = sshll.u32 %s3285_s29, 1 }
  0x2a   : > { %3220 = sst [smem:[#allocation31_spill]] %s3219_s9  ;;  %p52_p9 = scmp.eq.s32.totalorder %s51_s24, 0 }
  0x2b   : > { %s1805_s6 = sadd.s32 4294967295, %s1804_s8  ;;  %s3291_s7 = smov (!%p79_p8, %s1803_s7), 0 }
  0x2c   : > { %s2624_s4 = scalar_select %p52_p9, %s2404_s21, %s54_s11  }
  0x2d   : > { %p83_p10 = scmp.gt.s32.totalorder %s1805_s6, 0  ;;  %s90_s22 = sadd.s32 1, %s2392_s18 }
  0x2e   : > { %3221 = sst [smem:[#allocation32_spill]] %s2624_s4  ;;  %p97_p11 = scmp.ne.s32.totalorder %s2392_s18, %s2388_s17 }
  0x2f   : > { %p103_p12 = scmp.ne.s32.totalorder %s2388_s17, %s2384_s16  ;;  %s3293_s6 = smov (!%p83_p10, %s1805_s6), 0 }
  0x30   : > { %p2633_p13 = por %p97_p11, %p62_p2  ;;  %s86_s12 = ssub.s32 %s3291_s7, %s3293_s6 }
  0x31   : > { %p2639_p0 = por %p103_p12, %p68_p6  ;;  %s1912_s30 = sadd.s32 2, %s2601_s10 }
  0x32   : > { %s87_s29 = sor.u32 %s86_s12, %s2617_s5  ;;  %p115_p4 = scmp.lt.s32.totalorder %s1912_s30, 7 }
  0x33   : > { %s3223_s11 = scalar_select %p2639_p0, 1, 0 }
  0x34   : > { %p88_p8 = scmp.eq.s32.totalorder %s87_s29, 0  ;;  %s1914_s16 = sadd.s32 2, %s1804_s8 }
  0x35   : > { %3224 = sst [smem:[#allocation33_spill]] %s3223_s11  ;;  %s3295_s30 = smov (!%p115_p4, %s1912_s30), 7 }
  0x36   : > { %s2649_s4 = scalar_select %p88_p8, %s2392_s18, %s90_s22  }
  0x37   : > { %p119_p9 = scmp.lt.s32.totalorder %s1914_s16, 7  ;;  %s126_s6 = sadd.s32 1, %s2380_s15 }
  0x38   : > { %3225 = sst [smem:[#allocation34_spill]] %s2649_s4  ;;  %p133_p10 = scmp.ne.s32.totalorder %s2380_s15, %s2376_s14 }
  0x39   : > { %p139_p11 = scmp.ne.s32.totalorder %s2376_s14, %s2372_s13  ;;  %s3297_s16 = smov (!%p119_p9, %s1914_s16), 7 }
  0x3a   : > { %p2658_p12 = por %p133_p10, %p62_p2  ;;  %s122_s29 = ssub.s32 %s3295_s30, %s3297_s16 }
  0x3b   : > { %p2664_p5 = por %p139_p11, %p68_p6  ;;  %p303_p4 = scmp.eq.s32.totalorder %s2574_s27, 7 }
  0x3c   : > { %s123_s23 = sor.u32 %s122_s29, %s2617_s5  ;;  %s3229_s22 = sadd.s32 4294967294, %s2424_s26  }
  0x3d   : > { %s3227_s8 = scalar_select %p2664_p5, 1, 0 }
  0x3e   : > { %p309_p8 = scmp.eq.s32.totalorder %s3229_s22, 7  ;;  %p124_p1 = scmp.eq.s32.totalorder %s123_s23, 0 }
  0x3f   : > { %3228 = sst [smem:[#allocation35_spill]] %s3227_s8  ;;  %p3230_p0 = scmp.ne.s32.totalorder %s2404_s21, %s2400_s20 }
  0x40   : > { %p3233_p2 = scmp.ne.s32.totalorder %s2400_s20, %s2396_s19  ;;  %p1809_p6 = scmp.ge.s32.totalorder %s2424_s26, 8 }
  0x41   : > { %p2676_p7 = por %p303_p4, %p3230_p0  ;;  %s2692_s5 = sshll.u32 (!%p1809_p6), %s2420_s25, 5 }
  0x42   : > { %p2683_p9 = por %p309_p8, %p3233_p2  ;;  %s392_s23 = sand.u32 (!%p1809_p6), 1, %s2424_s26  }
  0x43   : > { %s3231_s13 = scalar_select %p2676_p7, 1, 0 }
  0x44   : > { %s3234_s4 = scalar_select %p2683_p9, 1, 0 }
  0x45   : > { %3232 = sst [smem:[#allocation36_spill]] %s3231_s13  ;;  %365 = sbr.rel (%p1809_p6) target bundleno = 129 (0x81), region = 32 }
  0x46   : > { %3235 = sst [smem:[#allocation37_spill]] %s3234_s4  ;;  %s394_s16 = sand.u32 (!%p1809_p6), 1, %s2392_s18  }
  0x47   : > { %s2688_s14 = scalar_select %p124_p1, %s2380_s15, %s126_s6  }
  0x48   : > { %s1814_s29 = sshll.u32 (!%p1809_p6), %s394_s16, 5  ;;  %s405_s22 = sadd.s32 (!%p1809_p6), %s2692_s5, %s3291_s7 }
  0x49   : > { %3236 = sst [smem:[#allocation38_spill]] %s2688_s14  ;;  %s1818_s19 = sshll.u32 (!%p1809_p6), %s405_s22, 7 }
  0x4a   : > { %s396_s13 = scalar_lea.vmem [#allocation7], %s1814_s29  ;;  %s3237_s1 = sld [smem:[#allocation40_spill]] }
  0x4b   : > { %s408_s4 = sshll.u32 %s396_s13, 4  ;;  %s2701_s11 = scalar_lea.sflag [#allocation8], %s392_s23  ;;  %s409_s4 = int_to_ptr.vmem [resolvable:$true] %s408_s4 }
  0x4c   : > { %s2176_s17 = scalar_lea.vmem %s409_s4, 512  ;;  %s2426_s27 = smov [#allocation7]  }
  0x4d   : > { %p2177_p1 = scmp.ne.s32.totalorder %s409_s4, %s2176_s17  ;;  %s2180_s9 = sshll.u32 %s2426_s27, 4  ;;  %s2181_s9 = int_to_ptr.vmem [resolvable:$false] %s2180_s9 }
  0x4e   : > { %s2182_s16 = scalar_lea.vmem %s2181_s9, 1024  ;;  %p2183_p11 = scmp.lt.s32.totalorder %s409_s4, %s2181_s9 }
  0x4f   : > { %p2178_p0 = pnand %p2177_p1, %p2633_p13  ;;  %p2184_p4 = scmp.lt.s32.totalorder %s2182_s16, %s2176_s17 }
  0x50   : > { %s407_s8 = scalar_lea.hbm %s3237_s1, %s1818_s19 }
  0x51   : > { %p2179_p10 = pneg %p2178_p0  ;;  %p2185_p8 = por %p2184_p4, %p2183_p11 }
  0x53   : > { %p2186_p2 = pnand %p2185_p8, %p2179_p10 }
  0x55   : > { %2189 = shalt.err (!%p2186_p2)
}
  0x56   : > { %s2427_s7 = smov 1024   ;;  %s3193_s14 = smov 128  }
  0x57   : > { %s3194_s19 = smov 8   ;;  %s2712_s9 = sand.u32 1, %s2404_s21  }
  0x58   : > { %1949 = dma.hbm_to_vmem [thread:$0]  (%p2633_p13), %s407_s8, 512, %s409_s4, %s2701_s11, %s2427_s7, %s3193_s14, %s3194_s19  }
  0x59   : > { %s379_s17 = sadd.s32 %s2692_s5, %s2601_s10  ;;  %s1810_s27 = sshll.u32 %s2712_s9, 6 }
  0x5a   : > { %s1813_s13 = sshll.u32 %s379_s17, 7  ;;  %s3238_s0 = sld [smem:[#allocation39_spill]] }
  0x5b   : > { %s373_s6 = scalar_lea.vmem [#allocation4], %s1810_s27  ;;  %s420_s1 = sand.u32 1, %s2380_s15  }
  0x5c   : > { %s382_s16 = sshll.u32 %s373_s6, 4  ;;  %s370_s24 = scalar_lea.sflag [#allocation5], %s2712_s9  ;;  %s383_s16 = int_to_ptr.vmem [resolvable:$true] %s382_s16 }
  0x5d   : > { %s2202_s18 = scalar_lea.vmem %s383_s16, 1024  ;;  %s2430_s4 = smov [#allocation4]  }
  0x5e   : > { %p2203_p6 = scmp.ne.s32.totalorder %s383_s16, %s2202_s18  ;;  %s2206_s8 = sshll.u32 %s2430_s4, 4  ;;  %s2207_s8 = int_to_ptr.vmem [resolvable:$false] %s2206_s8 }
  0x5f   : > { %s2208_s14 = scalar_lea.vmem %s2207_s8, 2048  ;;  %p2209_p0 = scmp.lt.s32.totalorder %s383_s16, %s2207_s8 }
  0x60   : > { %s381_s22 = scalar_lea.hbm %s3238_s0, %s1813_s13  ;;  %p2204_p13 = pnand %p2203_p6, %p2593_p3 }
  0x61   : > { %p2210_p10 = scmp.lt.s32.totalorder %s2208_s14, %s2202_s18 }
  0x62   : > { %p2205_p1 = pneg %p2204_p13 }
  0x63   : > { %p2211_p11 = por %p2210_p10, %p2209_p0 }
  0x65   : > { %p2212_p4 = pnand %p2211_p11, %p2205_p1 }
  0x67   : > { %2215 = shalt.err (!%p2212_p4)
}
  0x68   : > { %s2431_s17 = smov 256   ;;  %s2432_s27 = smov 16  }
  0x69   : > { %1948 = dma.hbm_to_vmem [thread:$0]  (%p2593_p3), %s381_s22, 1024, %s383_s16, %s370_s24, %s2427_s7, %s2431_s17, %s2432_s27  }
  0x6a   : > { %s1819_s13 = sshll.u32 %s420_s1, 5  ;;  %s431_s23 = sadd.s32 %s2692_s5, %s3295_s30 }
  0x6b   : > { %s1822_s29 = sshll.u32 %s431_s23, 7  ;;  %s422_s18 = scalar_lea.vmem [#allocation9], %s1819_s13 }
  0x6c   : > { %s433_s8 = scalar_lea.hbm %s3155_s2, %s1822_s29  ;;  %s434_s14 = sshll.u32 %s422_s18, 4  ;;  %s435_s14 = int_to_ptr.vmem [resolvable:$true] %s434_s14 }
  0x6d   : > { %s2228_s19 = scalar_lea.vmem %s435_s14, 512  ;;  %s2433_s0 = smov [#allocation9]  }
  0x6e   : > { %p2229_p8 = scmp.ne.s32.totalorder %s435_s14, %s2228_s19  ;;  %s2232_s21 = sshll.u32 %s2433_s0, 4  ;;  %s2233_s21 = int_to_ptr.vmem [resolvable:$false] %s2232_s21 }
  0x6f   : > { %s2234_s15 = scalar_lea.vmem %s2233_s21, 1024  ;;  %p2235_p13 = scmp.lt.s32.totalorder %s435_s14, %s2233_s21 }
  0x70   : > { %p2230_p2 = pnand %p2229_p8, %p2658_p12  ;;  %p2236_p1 = scmp.lt.s32.totalorder %s2234_s15, %s2228_s19 }
  0x72   : > { %p2231_p6 = pneg %p2230_p2  ;;  %p2237_p0 = por %p2236_p1, %p2235_p13 }
  0x74   : > { %p2238_p10 = pnand %p2237_p0, %p2231_p6 }
  0x76   : > { %2241 = shalt.err (!%p2238_p10)
}
  0x77   : > { %s3239_s1 = smov 8   ;;  %s3240_s30 = smov 128  }
  0x78   : > { %1950 = dma.hbm_to_vmem [thread:$0]  (%p2658_p12), %s433_s8, 512, %s435_s14, %s2701_s11, %s2427_s7, %s3240_s30, %s3239_s1  }
  0x79   : > { %443 = sbr.rel (!%p2593_p3) target bundleno = 129 (0x81), region = 48  ;;  %s1823_s0 = sshll.u32 (%p2593_p3), %s2712_s9, 4 }
  0x7a   : > { %s1825_s5 = sshll.u32 (%p2593_p3), %s2420_s25, 4  ;;  %s447_s12 = scalar_lea.vmem (%p2593_p3), [#allocation10], %s1823_s0 }
  0x7b   : > { %s450_s21 = sadd.s32 (%p2593_p3), %s1825_s5, %s2601_s10 }
  0x7c   : > { %s1826_s15 = sshll.u32 (%p2593_p3), %s450_s21, 2 }
  0x7d   : > { %s452_s16 = scalar_lea.vmem (%p2593_p3), %s3156_s3, %s1826_s15 }
  0x7e   : > { %v483_v0 = vld [vmem:[%s452_s16] sm:$0xff] }
  0x7f   : > { %v485_v1 = vld [vmem:[%s452_s16 + $0x20] sm:$0xff]  ;;  %484 = vst [vmem:[%s447_s12] sm:$0xff] %v483_v0 }
  0x80   : > { %486 = vst [vmem:[%s447_s12 + $0x8] sm:$0xff] %v485_v1 }
  0x81 PF: > { %p1827_p3 = scmp.ge.s32.totalorder %s2424_s26, 1  ;;  %p499_p12 = scmp.lt.s32.totalorder %s2424_s26, 9 }
  0x83   : > { %p500_p11 = pnand %p1827_p3, %p499_p12 }
  0x84   : > { %s3241_s10 = sld [smem:[#allocation31_spill]] (!%p500_p11)  ;;  %s2751_s28 = sand.u32 (!%p500_p11), 1, %s2400_s20  }
  0x85   : > { %503 = sbr.rel (%p500_p11) target bundleno = 1127 (0x467), region = 90  ;;  %s1828_s11 = sshll.u32 (!%p500_p11), %s2751_s28, 6 }
  0x86   : > { %s506_s7 = scalar_lea.sflag (!%p500_p11), [#allocation5], %s2751_s28  ;;  %s2757_s9 = scalar_lea.vmem (!%p500_p11), [#allocation4], %s1828_s11 }
  0x8a   : > { %p3242_p4 = scmp.ne.s32.totalorder %s3241_s10, 0 }
  0x8c   : > { %2351 = dma.done.wait (%p3242_p4), %s506_s7, 1024  }
  0x8d   : > { %2353 = vsyncadd (%p3242_p4), %s506_s7, 4294966272  ;;  %s3243_s24 = sld [smem:[#allocation28_spill]] }
  0x8e   : > { %s3244_s17 = sld [smem:[#allocation21_spill]] }
  0x8f   : > { %s3245_s27 = sld [smem:[#allocation33_spill]] }
  0x93   : > { %s514_s13 = sand.u32 1, %s3243_s24  }
  0x94   : > { %s516_s23 = sand.u32 1, %s3244_s17   ;;  %s515_s6 = scalar_lea.sflag [#allocation8], %s514_s13 }
  0x95   : > { %s1829_s29 = sshll.u32 %s516_s23, 5  ;;  %p3246_p8 = scmp.ne.s32.totalorder %s3245_s27, 0 }
  0x96   : > { %s2765_s4 = scalar_lea.vmem [#allocation7], %s1829_s29 }
  0x97   : > { %2355 = dma.done.wait (%p3246_p8), %s515_s6, 512  }
  0x98   : > { %2357 = vsyncadd (%p3246_p8), %s515_s6, 4294966784  ;;  %s3247_s8 = sld [smem:[#allocation19_spill]] }
  0x9e   : > { %s525_s14 = sand.u32 1, %s3247_s8  }
  0x9f   : > { %s1830_s1 = sshll.u32 %s525_s14, 5 }
  0xa0   : > { %s2772_s30 = scalar_lea.vmem [#allocation9], %s1830_s1 }
  0xa1   : > { %2359 = dma.done.wait (%p2664_p5), %s515_s6, 512  }
  0xa2   : > { %2361 = vsyncadd (%p2664_p5), %s515_s6, 4294966784  ;;  %s3249_s0 = sld [smem:[#allocation26_spill]]  ;;  %s1831_s21 = sshll.u32 %s2751_s28, 4  ;;  %v2790_v2 = vld [vmem:[%s2757_s9] sm:$0xff]  ;;  %v2793_v3 = vld [vmem:[%s2757_s9 + $0x8] sm:$0xff] }
  0xa3   : > { %s3250_s5 = sld [smem:[#allocation25_spill]]  ;;  %s1833_s15 = sshll.u32 %s2751_s28, 5  ;;  %v2796_v4 = vld [vmem:[%s2757_s9 + $0x10] sm:$0xff]  ;;  %v2799_v5 = vld [vmem:[%s2757_s9 + $0x18] sm:$0xff]  ;;  %v2802_v6 = vld [vmem:[%s2757_s9 + $0x20] sm:$0xff] }
  0xa4   : > { %s3251_s10 = sld [smem:[#allocation41_spill]]  ;;  %v2805_v7 = vld [vmem:[%s2757_s9 + $0x28] sm:$0xff]  ;;  %v2808_v8 = vld [vmem:[%s2757_s9 + $0x30] sm:$0xff]  ;;  %v2811_v9 = vld [vmem:[%s2757_s9 + $0x38] sm:$0xff]  ;;  %s2827_s13 = scalar_lea.vmem [#allocation10], %s1831_s21 }
  0xa5   : > { %s2831_s23 = scalar_lea.vmem [#allocation11], %s1828_s11  ;;  %s2833_s9 = scalar_lea.vmem [#allocation12], %s1833_s15 }
  0xa8   : > { %p605_p2 = scmp.lt.s32.totalorder %s3249_s0, 1 }
  0xa9   : > { %p625_p5 = scmp.eq.s32.totalorder %s3250_s5, 0  ;;  %s1918_s22 = sshll.u32 %s3250_s5, 8 }
  0xaa   : > { %s3299_s0 = smov (!%p605_p2, %s3249_s0), 1  ;;  %s1919_s24 = sadd.s32 256, %s1918_s22 }
  0xab   : > { %s1917_s19 = sshll.u32 %s3299_s0, 5  ;;  %s628_s17 = sadd.s32 128, %s1919_s24 }
  0xac   : > { %s609_s7 = scalar_lea.vmem %s3251_s10, %s1917_s19  ;;  %p629_p6 = scmp.gt.s32.totalorder %s628_s17, 1000 }
  0xad   : > { %v2813_v10 = vld [vmem:[%s609_s7] sm:$0xff]  ;;  %v2815_v11 = vld [vmem:[%s609_s7 + $0x8] sm:$0xff]  ;;  %v2817_v12 = vld [vmem:[%s609_s7 + $0x10] sm:$0xff] }
  0xae   : > { %v2819_v13 = vld [vmem:[%s609_s7 + $0x18] sm:$0xff]  ;;  %p2823_p13 = por %p629_p6, %p625_p5 }
  0xaf   : > { %v2434_v14 = vmov (%p2823_p13), 0   ;;  %v634_v15 = vlaneseq (%p2823_p13)  ;;  %s1838_s11 = sadd.s32 (%p2823_p13), 4294967168, %s1918_s22  ;;  %v764_v25 = vld [vmem:[%s2772_s30 + $0x10] sm:$0xff] (%p2823_p13)  ;;  %v762_v27 = vld [vmem:[%s2772_s30] sm:$0xff] (%p2823_p13)  ;;  %v2435_v30 = vmov (%p2823_p13), 0.0   ;;  %v669_v44 = vld [vmem:[%s2765_s4 + $0x18] sm:$0xff] (%p2823_p13) }
  0xb0   : > { %633 = sbr.rel (!%p2823_p13) target bundleno = 317 (0x13d), region = 110  ;;  %2096 = vset.pattern.permute.xlu1 (%p2823_p13), %v2434_v14  ;;  %2095 = vset.pattern.permute.xlu0 (%p2823_p13), %v2434_v14  ;;  %v641_v18 = vstv (%p2823_p13), %s1838_s11  ;;  %v668_v26 = vld [vmem:[%s2765_s4 + $0x10] sm:$0xff] (%p2823_p13)  ;;  %v666_v28 = vld [vmem:[%s2765_s4] sm:$0xff] (%p2823_p13)  ;;  %v765_v53 = vld [vmem:[%s2772_s30 + $0x18] sm:$0xff] (%p2823_p13) }
  0xb1   : > { %682 = vperm.xlu1 (%p2823_p13), %2096, %v2817_v12   ;;  %672 = vperm.xlu0 (%p2823_p13), %2095, %v2813_v10   ;;  %v635_v16 = vand.u32 (%p2823_p13), 127, %v634_v15  ;;  %v667_v56 = vld [vmem:[%s2765_s4 + $0x8] sm:$0xff] (%p2823_p13) }
  0xb2   : > { %v763_v61 = vld [vmem:[%s2772_s30 + $0x8] sm:$0xff] (%p2823_p13) }
  0xb3   : > { %v636_v17 = vadd.s32 (%p2823_p13), 128, %v635_v16  ;;  %v637_v19 = vadd.s32 (%p2823_p13), 256, %v635_v16  ;;  %v638_v20 = vadd.s32 (%p2823_p13), 384, %v635_v16  ;;  %v642_v21 = vadd.s32 (%p2823_p13), %v641_v18, %v635_v16 }
  0xb5   : > { %687 = vperm.xlu1 %2096, %v2819_v13   ;;  %677 = vperm.xlu0 %2095, %v2815_v11   ;;  %v643_v22 = vadd.s32 %v641_v18, %v636_v17  ;;  %v644_v23 = vadd.s32 %v641_v18, %v637_v19  ;;  %v645_v24 = vadd.s32 %v641_v18, %v638_v20  ;;  %vm646_vm0 = vcmp.ge.s32.totalorder %v642_v21, 0 }
  0xb6   : > { %vm650_vm1 = vcmp.lt.s32.totalorder %v642_v21, 1000 }
  0xb7   : > { %vm647_vm2 = vcmp.ge.s32.totalorder %v643_v22, 0  ;;  %vm651_vm3 = vcmp.lt.s32.totalorder %v643_v22, 1000  ;;  %vm648_vm4 = vcmp.ge.s32.totalorder %v644_v23, 0  ;;  %vm652_vm5 = vcmp.lt.s32.totalorder %v644_v23, 1000  ;;  %vm654_vm8 = vmand %vm646_vm0, %vm650_vm1 }
  0xb8   : > { %vm649_vm6 = vcmp.ge.s32.totalorder %v645_v24, 0  ;;  %vm653_vm7 = vcmp.lt.s32.totalorder %v645_v24, 1000  ;;  %vm655_vm9 = vmand %vm647_vm2, %vm651_vm3  ;;  %v1839_v31 = vsel %vm654_vm8, 1.0, %v2435_v30 }
  0xb9   : > { %vm656_vm10 = vmand %vm648_vm4, %vm652_vm5  ;;  %v1840_v32 = vsel %vm655_vm9, 1.0, %v2435_v30 }
  0xba   : > { %vm657_vm11 = vmand %vm649_vm6, %vm653_vm7  ;;  %v1841_v33 = vsel %vm656_vm10, 1.0, %v2435_v30 }
  0xbb   : > { %v1842_v34 = vsel %vm657_vm11, 1.0, %v2435_v30 }
 0x12c   : > { %v683_v29 = vpop.permute.xlu1 %682  ;;  %v673_v35 = vpop.permute.xlu0 %672 }
 0x12d   : > { %v692_v36 = vadd.f32 %v683_v29, %v668_v26  ;;  %v722_v37 = vadd.f32 %v683_v29, %v2802_v6  ;;  %v723_v38 = vadd.f32 %v683_v29, %v2805_v7  ;;  %v768_v39 = vadd.f32 %v764_v25, %v683_v29 }
 0x12e   : > { %v690_v40 = vadd.f32 %v673_v35, %v666_v28  ;;  %v718_v41 = vadd.f32 %v673_v35, %v2790_v2  ;;  %v719_v42 = vadd.f32 %v673_v35, %v2793_v3  ;;  %v766_v43 = vadd.f32 %v762_v27, %v673_v35 }
 0x12f   : > { %v696_v45 = vmul.f32 %v1839_v31, %v692_v36  ;;  %v730_v46 = vmul.f32 %v1840_v32, %v722_v37  ;;  %v731_v47 = vmul.f32 %v1841_v33, %v723_v38  ;;  %v772_v48 = vmul.f32 %v1842_v34, %v768_v39 }
 0x130   : > { %v694_v49 = vmul.f32 %v1839_v31, %v690_v40  ;;  %v726_v50 = vmul.f32 %v1840_v32, %v718_v41  ;;  %v727_v51 = vmul.f32 %v1841_v33, %v719_v42  ;;  %v770_v52 = vmul.f32 %v1842_v34, %v766_v43  ;;  %v688_v54 = vpop.permute.xlu1 %687  ;;  %v678_v55 = vpop.permute.xlu0 %677 }
 0x131   : > { %v1922_v57 = vpack.c.bf16 %v696_v45, %v696_v45  ;;  %v1926_v58 = vpack.c.bf16 %v731_v47, %v730_v46  ;;  %v1930_v59 = vpack.c.bf16 %v772_v48, %v772_v48  ;;  %v693_v60 = vadd.f32 %v688_v54, %v669_v44 }
 0x132   : > { %v1920_v62 = vpack.c.bf16 %v694_v49, %v694_v49  ;;  %v1924_v63 = vpack.c.bf16 %v727_v51, %v726_v50  ;;  %v1928_v0 = vpack.c.bf16 %v770_v52, %v770_v52  ;;  %v724_v1 = vadd.f32 %v688_v54, %v2808_v8 }
 0x133   : > { %716 = vst [vmem:[#allocation2 + $0x20] sm:$0xf] %v1922_v57  ;;  %760 = vst [vmem:[#allocation2 + $0x24] sm:$0xff] %v1926_v58  ;;  %v697_v14 = vmul.f32 %v1839_v31, %v693_v60  ;;  %v725_v15 = vadd.f32 %v688_v54, %v2811_v9  ;;  %v769_v16 = vadd.f32 %v765_v53, %v688_v54 }
 0x134   : > { %792 = vst [vmem:[#allocation2 + $0x2c] sm:$0xf] %v1930_v59  ;;  %v691_v17 = vadd.f32 %v678_v55, %v667_v56  ;;  %714 = vst [vmem:[#allocation2] sm:$0xf] %v1920_v62  ;;  %v732_v18 = vmul.f32 %v1840_v32, %v724_v1  ;;  %v720_v19 = vadd.f32 %v678_v55, %v2796_v4 }
 0x135   : > { %758 = vst [vmem:[#allocation2 + $0x4] sm:$0xff] %v1924_v63  ;;  %790 = vst [vmem:[#allocation2 + $0xc] sm:$0xf] %v1928_v0  ;;  %v721_v20 = vadd.f32 %v678_v55, %v2799_v5  ;;  %v767_v21 = vadd.f32 %v763_v61, %v678_v55  ;;  %v1923_v22 = vpack.c.bf16 %v697_v14, %v697_v14 }
 0x136   : > { %v733_v23 = vmul.f32 %v1841_v33, %v725_v15  ;;  %v773_v24 = vmul.f32 %v1842_v34, %v769_v16  ;;  %v695_v25 = vmul.f32 %v1839_v31, %v691_v17  ;;  %v728_v26 = vmul.f32 %v1840_v32, %v720_v19 }
 0x137   : > { %v729_v27 = vmul.f32 %v1841_v33, %v721_v20  ;;  %v771_v28 = vmul.f32 %v1842_v34, %v767_v21  ;;  %717 = vst [vmem:[#allocation2 + $0x30] sm:$0xf] %v1923_v22 }
 0x138   : > { %v1927_v29 = vpack.c.bf16 %v733_v23, %v732_v18  ;;  %v1931_v30 = vpack.c.bf16 %v773_v24, %v773_v24  ;;  %v1921_v35 = vpack.c.bf16 %v695_v25, %v695_v25 }
 0x139   : > { %v1925_v36 = vpack.c.bf16 %v729_v27, %v728_v26  ;;  %v1929_v37 = vpack.c.bf16 %v771_v28, %v771_v28 }
 0x13a   : > { %761 = vst [vmem:[#allocation2 + $0x34] sm:$0xff] %v1927_v29  ;;  %793 = vst [vmem:[#allocation2 + $0x3c] sm:$0xf] %v1931_v30 }
 0x13b   : > { %715 = vst [vmem:[#allocation2 + $0x10] sm:$0xf] %v1921_v35  ;;  %759 = vst [vmem:[#allocation2 + $0x14] sm:$0xff] %v1925_v36 }
 0x13c   : > { %791 = vst [vmem:[#allocation2 + $0x1c] sm:$0xf] %v1929_v37 }
 0x13d PF: > { %796 = sbr.rel (%p2823_p13) target bundleno = 460 (0x1cc), region = 114 }
 0x142   : > { %v2436_v38 = vmov 0   ;;  %v883_v31 = vld [vmem:[%s2772_s30 + $0x10] sm:$0xff]  ;;  %v881_v33 = vld [vmem:[%s2772_s30] sm:$0xff]  ;;  %v884_v45 = vld [vmem:[%s2772_s30 + $0x18] sm:$0xff] }
 0x143   : > { %2098 = vset.pattern.permute.xlu1 %v2436_v38  ;;  %2097 = vset.pattern.permute.xlu0 %v2436_v38  ;;  %v799_v32 = vld [vmem:[%s2765_s4 + $0x10] sm:$0xff]  ;;  %v797_v34 = vld [vmem:[%s2765_s4] sm:$0xff]  ;;  %v800_v46 = vld [vmem:[%s2765_s4 + $0x18] sm:$0xff] }
 0x144   : > { %813 = vperm.xlu1 %2098, %v2817_v12   ;;  %803 = vperm.xlu0 %2097, %v2813_v10   ;;  %v882_v50 = vld [vmem:[%s2772_s30 + $0x8] sm:$0xff] }
 0x145   : > { %v798_v51 = vld [vmem:[%s2765_s4 + $0x8] sm:$0xff] }
 0x148   : > { %818 = vperm.xlu1 %2098, %v2819_v13   ;;  %808 = vperm.xlu0 %2097, %v2815_v11  }
 0x1bf   : > { %v814_v39 = vpop.permute.xlu1 %813  ;;  %v804_v40 = vpop.permute.xlu0 %803 }
 0x1c0   : > { %v823_v41 = vadd.f32 %v814_v39, %v799_v32  ;;  %v849_v42 = vadd.f32 %v814_v39, %v2802_v6  ;;  %v850_v12 = vadd.f32 %v814_v39, %v2805_v7  ;;  %v887_v10 = vadd.f32 %v883_v31, %v814_v39 }
 0x1c1   : > { %v821_v43 = vadd.f32 %v804_v40, %v797_v34  ;;  %v845_v13 = vadd.f32 %v804_v40, %v2790_v2  ;;  %v846_v11 = vadd.f32 %v804_v40, %v2793_v3  ;;  %v885_v44 = vadd.f32 %v881_v33, %v804_v40 }
 0x1c2   : > { %v1934_v47 = vpack.c.bf16 %v823_v41, %v823_v41  ;;  %v1938_v48 = vpack.c.bf16 %v850_v12, %v849_v42  ;;  %v1942_v49 = vpack.c.bf16 %v887_v10, %v887_v10 }
 0x1c3   : > { %v1932_v52 = vpack.c.bf16 %v821_v43, %v821_v43  ;;  %v1936_v53 = vpack.c.bf16 %v846_v11, %v845_v13  ;;  %v1940_v54 = vpack.c.bf16 %v885_v44, %v885_v44  ;;  %v819_v55 = vpop.permute.xlu1 %818  ;;  %v809_v56 = vpop.permute.xlu0 %808 }
 0x1c4   : > { %843 = vst [vmem:[#allocation2 + $0x20] sm:$0xf] %v1934_v47  ;;  %879 = vst [vmem:[#allocation2 + $0x24] sm:$0xff] %v1938_v48  ;;  %v824_v57 = vadd.f32 %v819_v55, %v800_v46  ;;  %v851_v58 = vadd.f32 %v819_v55, %v2808_v8  ;;  %v852_v59 = vadd.f32 %v819_v55, %v2811_v9 }
 0x1c5   : > { %907 = vst [vmem:[#allocation2 + $0x2c] sm:$0xf] %v1942_v49  ;;  %v888_v60 = vadd.f32 %v884_v45, %v819_v55  ;;  %841 = vst [vmem:[#allocation2] sm:$0xf] %v1932_v52  ;;  %v822_v61 = vadd.f32 %v809_v56, %v798_v51  ;;  %v847_v62 = vadd.f32 %v809_v56, %v2796_v4 }
 0x1c6   : > { %877 = vst [vmem:[#allocation2 + $0x4] sm:$0xff] %v1936_v53  ;;  %905 = vst [vmem:[#allocation2 + $0xc] sm:$0xf] %v1940_v54  ;;  %v848_v63 = vadd.f32 %v809_v56, %v2799_v5  ;;  %v886_v0 = vadd.f32 %v882_v50, %v809_v56  ;;  %v1935_v1 = vpack.c.bf16 %v824_v57, %v824_v57 }
 0x1c7   : > { %v1939_v14 = vpack.c.bf16 %v852_v59, %v851_v58  ;;  %v1943_v15 = vpack.c.bf16 %v888_v60, %v888_v60  ;;  %v1933_v16 = vpack.c.bf16 %v822_v61, %v822_v61 }
 0x1c8   : > { %v1937_v17 = vpack.c.bf16 %v848_v63, %v847_v62  ;;  %v1941_v18 = vpack.c.bf16 %v886_v0, %v886_v0  ;;  %844 = vst [vmem:[#allocation2 + $0x30] sm:$0xf] %v1935_v1 }
 0x1c9   : > { %880 = vst [vmem:[#allocation2 + $0x34] sm:$0xff] %v1939_v14  ;;  %908 = vst [vmem:[#allocation2 + $0x3c] sm:$0xf] %v1943_v15 }
 0x1ca   : > { %842 = vst [vmem:[#allocation2 + $0x10] sm:$0xf] %v1933_v16  ;;  %878 = vst [vmem:[#allocation2 + $0x14] sm:$0xff] %v1937_v17 }
 0x1cb   : > { %906 = vst [vmem:[#allocation2 + $0x1c] sm:$0xf] %v1941_v18 }
 0x1cc PF: > { %v2883_v20 = vld [vmem:[#allocation2 + $0x24] sm:$0xff]  ;;  %s2437_s6 = smov 124   ;;  %v980_v22 = vld [vmem:[#allocation2 + $0x2c] sm:$0xf]  ;;  %s2438_s4 = smov 4   ;;  %v2439_v39 = vmov 0  }
 0x1cd   : > { %999 = vrot.lane.b32.xlu0 %v2883_v20, %s2437_s6  ;;  %v976_v23 = vld [vmem:[#allocation2 + $0xc] sm:$0xf]  ;;  %v2887_v24 = vld [vmem:[#allocation2 + $0x4] sm:$0xff]  ;;  %1241 = vmatprep.mubr.bf16.mxu0 %v2439_v39  ;;  %s3254_s14 = sld [smem:[#allocation43_spill]]  ;;  %vm949_vm12 = vcmask 1043456   ;;  %vm1016_vm13 = vcmask 1014784  }
 0x1ce   : > { %v2101_v25 = vld [vmem:[%s2827_s13 + $0x4] ss:$8 sps:$4 sm:$0xff]   ;;  %v2103_v26 = vld [vmem:[%s2827_s13] ss:$8 sps:$4 sm:$0xff]   ;;  %2100 = vset.pattern.permute.xlu1 %v2439_v39  ;;  %2099 = vset.pattern.permute.xlu0 %v2439_v39  ;;  %s3256_s11 = sld [smem:[#allocation45_spill]]  ;;  %vm951_vm14 = vcmask 31744  }
 0x1cf   : > { %1211 = vmatprep.subr.bf16.mxu0 %v2101_v25  ;;  %v914_v37 = vld [vmem:[#allocation2 + $0x28] sm:$0xf]  ;;  %v913_v38 = vld [vmem:[#allocation2 + $0x20] sm:$0xff]  ;;  %1463 = vmatprep.mubr.bf16.mxu1 %v2439_v39  ;;  %s3257_s24 = sld [smem:[#allocation42_spill]]  ;;  %vm1196_vm15 = vcmask 916480   ;;  %vm1418_vm0 = vcmask 261120  }
 0x1d0   : > { %v2881_v19 = vld [vmem:[#allocation2 + $0x34] sm:$0xff]  ;;  %v982_v21 = vld [vmem:[#allocation2 + $0x3c] sm:$0xf]  ;;  %1212 = vmatpush1.bf16.msra.mxu0 %v2103_v26  ;;  %v910_v33 = vld [vmem:[#allocation2 + $0x8] sm:$0xf]  ;;  %s3259_s30 = sld [smem:[#allocation44_spill]] }
 0x1d1   : > { %1003 = vrot.lane.b32.xlu1 %v2881_v19, %s2437_s6  ;;  %1001 = vrot.lane.b32.xlu0 %v980_v22, %s2437_s6  ;;  %v1878_v28 = vcombine.high %v2883_v20, %v2881_v19  ;;  %v2894_v29 = vld [vmem:[#allocation2 + $0x14] sm:$0xff]  ;;  %v1877_v30 = vcombine.low %v2883_v20, %v2881_v19  ;;  %v909_v34 = vld [vmem:[#allocation2] sm:$0xff]  ;;  %s3260_s16 = sld [smem:[#allocation25_spill]]  ;;  %s1577_s13 = sshll.u32 %s2831_s23, 4  ;;  %s3038_s13 = int_to_ptr.vmem [resolvable:$true] %s1577_s13 }
 0x1d2   : > { %v978_v27 = vld [vmem:[#allocation2 + $0x1c] sm:$0xf]  ;;  %v1876_v35 = vcombine.high %v2887_v24, %v2894_v29  ;;  %v1875_v36 = vcombine.low %v2887_v24, %v2894_v29  ;;  %v916_v31 = vld [vmem:[#allocation2 + $0x38] sm:$0xf]  ;;  %v915_v32 = vld [vmem:[#allocation2 + $0x30] sm:$0xff]  ;;  %s3261_s12 = sld [smem:[#allocation26_spill]] }
 0x1d3   : > { %v912_v40 = vld [vmem:[#allocation2 + $0x18] sm:$0xf]  ;;  %v911_v41 = vld [vmem:[#allocation2 + $0x10] sm:$0xff]  ;;  %s3255_s1 = smov %s3254_s14  ;;  %s2242_s0 = scalar_lea.vmem %s3038_s13, 1024 }
 0x1d4   : > { %v1061_v42 = vld [vmem:[%s3254_s14 + $0x18] sm:$0xff]  ;;  %v1060_v12 = vld [vmem:[%s3255_s1 + $0x10] sm:$0xff]  ;;  %v1058_v10 = vld [vmem:[%s3255_s1] sm:$0xff]  ;;  %s1557_s14 = scalar_lea.sflag [#allocation6], %s2751_s28  ;;  %p2243_p1 = scmp.ne.s32.totalorder %s3038_s13, %s2242_s0 }
 0x1d5   : > { %1005 = vrot.lane.b32.xlu1 %v982_v21, %s2437_s6  ;;  %991 = vrot.lane.b32.xlu0 %v2887_v24, %s2437_s6  ;;  %v1059_v43 = vld [vmem:[%s3255_s1 + $0x8] sm:$0xff]  ;;  %v1064_v13 = vld [vmem:[%s3255_s1 + $0x30] sm:$0xff]  ;;  %s3258_s27 = smov %s3257_s24  ;;  %s2440_s5 = smov [#allocation11]  }
 0x1d6   : > { %v1065_v11 = vld [vmem:[%s3255_s1 + $0x38] sm:$0xff]  ;;  %v1062_v44 = vld [vmem:[%s3255_s1 + $0x20] sm:$0xff]  ;;  %v1063_v45 = vld [vmem:[%s3255_s1 + $0x28] sm:$0xff]  ;;  %p2244_p0 = pnand %p2243_p1, %p2676_p7  ;;  %s2246_s21 = sshll.u32 %s2440_s5, 4  ;;  %s2247_s21 = int_to_ptr.vmem [resolvable:$false] %s2246_s21 }
 0x1d7   : > { %v1350_v46 = vld [vmem:[%s3256_s11] sm:$0xff]  ;;  %v1351_v47 = vld [vmem:[%s3256_s11 + $0x8] sm:$0xff]  ;;  %v1352_v48 = vld [vmem:[%s3256_s11 + $0x10] sm:$0xff]  ;;  %s1903_s10 = sshll.u32 %s3260_s16, 1  ;;  %s2248_s15 = scalar_lea.vmem %s2247_s21, 2048 }
 0x1d8   : > { %v1353_v49 = vld [vmem:[%s3256_s11 + $0x18] sm:$0xff]  ;;  %v1354_v50 = vld [vmem:[%s3256_s11 + $0x20] sm:$0xff]  ;;  %v1355_v51 = vld [vmem:[%s3256_s11 + $0x28] sm:$0xff]  ;;  %s1904_s7 = sshll.u32 %s3261_s12, 5  ;;  %p2245_p10 = pneg %p2244_p0 }
 0x1d9   : > { %993 = vrot.lane.b32.xlu1 %v976_v23, %s2437_s6  ;;  %995 = vrot.lane.b32.xlu0 %v2894_v29, %s2437_s6  ;;  %v1356_v52 = vld [vmem:[%s3256_s11 + $0x30] sm:$0xff]  ;;  %v1357_v53 = vld [vmem:[%s3256_s11 + $0x38] sm:$0xff]  ;;  %p2249_p3 = scmp.lt.s32.totalorder %s3038_s13, %s2247_s21  ;;  %p2250_p12 = scmp.lt.s32.totalorder %s2248_s15, %s2242_s0 }
 0x1da   : > { %v2108_v24 = vld [vmem:[%s3257_s24] sm:$0xff]   ;;  %v2109_v29 = vld [vmem:[%s3258_s27 + $0x8] sm:$0xff]   ;;  %s3023_s24 = sadd.s32 %s1904_s7, %s1903_s10 }
 0x1db   : > { %s1905_s17 = sshll.u32 %s3023_s24, 7  ;;  %p2251_p11 = por %p2250_p12, %p2249_p3 }
 0x1dd   : > { %997 = vrot.lane.b32.xlu1 %v978_v27, %s2437_s6  ;;  %933 = vrot.lane.b32.xlu0 %v913_v38, %s2438_s4  ;;  %p2252_p4 = pnand %p2251_p11, %p2245_p10 }
 0x1e1   : > { %935 = vrot.lane.b32.xlu1 %v914_v37, %s2438_s4  ;;  %937 = vrot.lane.b32.xlu0 %v915_v32, %s2438_s4 }
 0x1e5   : > { %939 = vrot.lane.b32.xlu1 %v916_v31, %s2438_s4  ;;  %925 = vrot.lane.b32.xlu0 %v909_v34, %s2438_s4 }
 0x1e9   : > { %927 = vrot.lane.b32.xlu1 %v910_v33, %s2438_s4  ;;  %929 = vrot.lane.b32.xlu0 %v911_v41, %s2438_s4 }
 0x1ed   : > { %931 = vrot.lane.b32.xlu1 %v912_v40, %s2438_s4  ;;  %1078 = vperm.xlu0 %2099, %v1060_v12   ;;  %s3262_s4 = sld [smem:[#allocation46_spill]] }
 0x1f1   : > { %1083 = vperm.xlu1 %2100, %v1061_v42   ;;  %1073 = vperm.xlu0 %2099, %v1059_v43  }
 0x1f3   : > { %s3036_s8 = scalar_lea.hbm %s3262_s4, %s1905_s17 }
 0x1f5   : > { %1068 = vperm.xlu1 %2100, %v1058_v10   ;;  %1103 = vperm.xlu0 %2099, %v1065_v11  }
 0x1f9   : > { %1098 = vperm.xlu1 %2100, %v1064_v13   ;;  %1093 = vperm.xlu0 %2099, %v1063_v45  }
 0x1fd   : > { %1088 = vperm.xlu1 %2100, %v1062_v44   ;;  %1365 = vperm.xlu0 %2099, %v1351_v47  }
 0x201   : > { %1360 = vperm.xlu1 %2100, %v1350_v46   ;;  %1375 = vperm.xlu0 %2099, %v1353_v49  }
 0x205   : > { %1370 = vperm.xlu1 %2100, %v1352_v48   ;;  %1385 = vperm.xlu0 %2099, %v1355_v51  }
 0x209   : > { %1380 = vperm.xlu1 %2100, %v1354_v50   ;;  %1395 = vperm.xlu0 %2099, %v1357_v53  }
 0x20d   : > { %1390 = vperm.xlu1 %2100, %v1356_v52  }
 0x23f   : > { %v1000_v55 = vpop.permute.xlu0 %999 }
 0x240   : > { %v1011_v59 = vrot.slane %v1000_v55, 4 }
 0x243   : > { %v1004_v54 = vpop.permute.xlu1 %1003  ;;  %v1002_v57 = vpop.permute.xlu0 %1001 }
 0x244   : > { %v1013_v58 = vrot.slane %v1004_v54, 4  ;;  %v1012_v61 = vrot.slane %v1002_v57, 4 }
 0x246   : > { %v1020_v63 = vsel %vm949_vm12, %v1011_v59, %v1012_v61 }
 0x247   : > { %v1006_v56 = vpop.permute.xlu1 %1005  ;;  %v992_v1 = vpop.permute.xlu0 %991  ;;  %v1021_v14 = vsel %vm1016_vm13, %v1000_v55, %v1020_v63 }
 0x248   : > { %v1014_v60 = vrot.slane %v1006_v56, 4  ;;  %v1007_v17 = vrot.slane %v992_v1, 4 }
 0x24a   : > { %v1022_v62 = vsel %vm949_vm12, %v1013_v58, %v1014_v60  ;;  %v2111_v58 = vld [vmem:[%s3258_s27 + $0x18] sm:$0xff]  }
 0x24b   : > { %v994_v0 = vpop.permute.xlu1 %993  ;;  %v1023_v15 = vsel %vm1016_vm13, %v1004_v54, %v1022_v62  ;;  %v996_v23 = vpop.permute.xlu0 %995 }
 0x24c   : > { %v1008_v16 = vrot.slane %v994_v0, 4  ;;  %v1882_v18 = vcombine.high %v1021_v14, %v1023_v15  ;;  %v1881_v21 = vcombine.low %v1021_v14, %v1023_v15  ;;  %v1009_v27 = vrot.slane %v996_v23, 4 }
 0x24e   : > { %1213 = vmatprep.subr.bf16.mxu0 %v1882_v18  ;;  %v1015_v25 = vsel %vm949_vm12, %v1007_v17, %v1008_v16 }
 0x24f   : > { %v998_v22 = vpop.permute.xlu1 %997  ;;  %1214 = vmatpush1.bf16.msra.mxu0 %v1881_v21  ;;  %v1017_v38 = vsel %vm1016_vm13, %v992_v1, %v1015_v25  ;;  %v934_v33 = vpop.permute.xlu0 %933 }
 0x250   : > { %v1010_v26 = vrot.slane %v998_v22, 4  ;;  %v945_v42 = vrot.slane %v934_v33, 4 }
 0x252   : > { %v1018_v37 = vsel %vm949_vm12, %v1009_v27, %v1010_v26 }
 0x253   : > { %v1019_v31 = vsel %vm1016_vm13, %v996_v23, %v1018_v37  ;;  %v936_v32 = vpop.permute.xlu1 %935  ;;  %v938_v10 = vpop.permute.xlu0 %937 }
 0x254   : > { %v1879_v34 = vcombine.low %v1017_v38, %v1019_v31  ;;  %v1880_v40 = vcombine.high %v1017_v38, %v1019_v31  ;;  %v946_v41 = vrot.slane %v936_v32, 4  ;;  %v947_v13 = vrot.slane %v938_v10, 4 }
 0x256   : > { %1215 = vmatprep.subr.bf16.mxu0 %v1880_v40  ;;  %v955_v11 = vsel %vm949_vm12, %v945_v42, %v946_v41 }
 0x257   : > { %1216 = vmatpush1.bf16.msra.mxu0 %v1879_v34  ;;  %v940_v12 = vpop.permute.xlu1 %939  ;;  %v926_v47 = vpop.permute.xlu0 %925 }
 0x258   : > { %v948_v43 = vrot.slane %v940_v12, 4  ;;  %1217 = vmatprep.subr.bf16.mxu0 %v1878_v28  ;;  %v941_v49 = vrot.slane %v926_v47, 4  ;;  %v956_v28 = vsel %vm951_vm14, %v934_v33, %v955_v11 }
 0x25a   : > { %v957_v44 = vsel %vm949_vm12, %v947_v13, %v948_v43 }
 0x25b   : > { %v958_v45 = vsel %vm951_vm14, %v938_v10, %v957_v44  ;;  %1218 = vmatpush1.bf16.msra.mxu0 %v1877_v30  ;;  %v928_v46 = vpop.permute.xlu1 %927  ;;  %v930_v52 = vpop.permute.xlu0 %929 }
 0x25c   : > { %v942_v48 = vrot.slane %v928_v46, 4  ;;  %1219 = vmatprep.subr.bf16.mxu0 %v1876_v35  ;;  %v1874_v50 = vcombine.high %v956_v28, %v958_v45  ;;  %v943_v30 = vrot.slane %v930_v52, 4  ;;  %v1873_v53 = vcombine.low %v956_v28, %v958_v45 }
 0x25e   : > { %v950_v19 = vsel %vm949_vm12, %v941_v49, %v942_v48 }
 0x25f   : > { %1220 = vmatpush1.bf16.msra.mxu0 %v1875_v36  ;;  %v932_v51 = vpop.permute.xlu1 %931  ;;  %v952_v55 = vsel %vm951_vm14, %v926_v47, %v950_v19  ;;  %v2110_v36 = vld [vmem:[%s3258_s27 + $0x10] sm:$0xff]  }
 0x260   : > { %v944_v20 = vrot.slane %v932_v51, 4  ;;  %1221 = vmatprep.subr.bf16.mxu0 %v1874_v50 }
 0x262   : > { %v953_v54 = vsel %vm949_vm12, %v943_v30, %v944_v20 }
 0x263   : > { %v954_v35 = vsel %vm951_vm14, %v930_v52, %v953_v54  ;;  %1222 = vmatpush1.bf16.msra.mxu0 %v1873_v53 }
 0x264   : > { %v1871_v56 = vcombine.low %v952_v55, %v954_v35  ;;  %v1872_v57 = vcombine.high %v952_v55, %v954_v35 }
 0x266   : > { %1223 = vmatprep.subr.bf16.mxu0 %v1872_v57 }
 0x267   : > { %1224 = vmatpush1.bf16.msra.mxu0 %v1871_v56 }
 0x268   : > { %v1079_v60 = vpop.permute.xlu0 %1078 }
 0x26a   : > { %1885 = vmatmul.mubr.msk.bf16.vlgmr.msra.gmra.mxu0 %vm1196_vm15, %v2108_v24 }
 0x26b   : > { %1251 = vmatprep.mubr.bf16.mxu0 %v2439_v39 }
 0x26c   : > { %v1084_v59 = vpop.permute.xlu1 %1083  ;;  %v1074_v1 = vpop.permute.xlu0 %1073 }
 0x270   : > { %v1069_v62 = vpop.permute.xlu1 %1068  ;;  %v1104_v47 = vpop.permute.xlu0 %1103 }
 0x272   : > { %1886 = vmatmul.mubr.msk.bf16.gmra.mxu0 %vm1196_vm15, %v2109_v29 }
 0x273   : > { %1261 = vmatprep.mubr.bf16.mxu0 %v2439_v39 }
 0x274   : > { %v1099_v13 = vpop.permute.xlu1 %1098  ;;  %v1094_v53 = vpop.permute.xlu0 %1093 }
 0x278   : > { %v1089_v52 = vpop.permute.xlu1 %1088 }
 0x27a   : > { %1887 = vmatmul.mubr.msk.bf16.gmra.mxu0 %vm1196_vm15, %v2110_v36 }
 0x27b   : > { %1271 = vmatprep.mubr.bf16.mxu0 %v2439_v39 }
 0x282   : > { %1888 = vmatmul.mubr.msk.bf16.gmra.mxu0 %vm1196_vm15, %v2111_v58 }
 0x32a   : > { %v1243_v61 = vpop.f32.mrf.mxu0 }
 0x32b   : > { %v1244_v17 = vadd.f32 %v1243_v61, %v1069_v62 }
 0x32c   : > { %v1245_v63 = vpop.f32.mrf.mxu0 }
 0x32d   : > { %v1246_v0 = vadd.f32 %v1245_v63, %v1069_v62  ;;  %v1282_v38 = vsub.f32 0.0, %v1244_v17 }
 0x32e   : > { %v1247_v14 = vpop.f32.mrf.mxu0 }
 0x32f   : > { %v1283_v15 = vsub.f32 0.0, %v1246_v0  ;;  %v1248_v16 = vadd.f32 %v1247_v14, %v1074_v1  ;;  %v1290_v10 = vmul.f32 1.442695, %v1282_v38 }
 0x330   : > { %v1249_v18 = vpop.f32.mrf.mxu0 }
 0x331   : > { %v1292_v21 = vmul.f32 1.442695, %v1283_v15  ;;  %v1284_v22 = vsub.f32 0.0, %v1248_v16  ;;  %v1250_v23 = vadd.f32 %v1249_v18, %v1074_v1 }
 0x332   : > { %v1253_v25 = vpop.f32.mrf.mxu0 }
 0x333   : > { %2116 = vpow2.f32 %v1292_v21  ;;  %v1294_v26 = vmul.f32 1.442695, %v1284_v22  ;;  %v1285_v27 = vsub.f32 0.0, %v1250_v23  ;;  %v1254_v37 = vadd.f32 %v1253_v25, %v1079_v60 }
 0x334   : > { %v1255_v31 = vpop.f32.mrf.mxu0 }
 0x335   : > { %2118 = vpow2.f32 %v1294_v26  ;;  %v1296_v32 = vmul.f32 1.442695, %v1285_v27  ;;  %v1286_v33 = vsub.f32 0.0, %v1254_v37  ;;  %v1256_v34 = vadd.f32 %v1255_v31, %v1079_v60 }
 0x336   : > { %v1257_v40 = vpop.f32.mrf.mxu0 }
 0x337   : > { %2120 = vpow2.f32 %v1296_v32  ;;  %v1298_v41 = vmul.f32 1.442695, %v1286_v33  ;;  %v1287_v42 = vsub.f32 0.0, %v1256_v34  ;;  %v1258_v12 = vadd.f32 %v1257_v40, %v1084_v59 }
 0x338   : > { %v1259_v43 = vpop.f32.mrf.mxu0 }
 0x339   : > { %2122 = vpow2.f32 %v1298_v41  ;;  %v1300_v11 = vmul.f32 1.442695, %v1287_v42  ;;  %v1288_v44 = vsub.f32 0.0, %v1258_v12  ;;  %v1260_v45 = vadd.f32 %v1259_v43, %v1084_v59 }
 0x33a   : > { %v1263_v46 = vpop.f32.mrf.mxu0 }
 0x33b   : > { %2124 = vpow2.f32 %v1300_v11  ;;  %v1302_v48 = vmul.f32 1.442695, %v1288_v44  ;;  %v1289_v49 = vsub.f32 0.0, %v1260_v45  ;;  %v1264_v26 = vadd.f32 %v1263_v46, %v1089_v52 }
 0x33c   : > { %2126 = vpow2.f32 %v1290_v10  ;;  %v1265_v28 = vpop.f32.mrf.mxu0 }
 0x33d   : > { %2128 = vpow2.f32 %v1302_v48  ;;  %v1304_v50 = vmul.f32 1.442695, %v1289_v49  ;;  %v1266_v20 = vadd.f32 %v1265_v28, %v1089_v52 }
 0x33e   : > { %v1267_v51 = vpop.f32.mrf.mxu0 }
 0x33f   : > { %2130 = vpow2.f32 %v1304_v50  ;;  %v1268_v25 = vadd.f32 %v1267_v51, %v1094_v53 }
 0x340   : > { %v2117_v19 = vpop.eup %2116  ;;  %v1269_v30 = vpop.f32.mrf.mxu0  ;;  %2132 = vtanh.f32 %v1266_v20 }
 0x341   : > { %v1307_v54 = vadd.f32 1.0, %v2117_v19  ;;  %v1270_v35 = vadd.f32 %v1269_v30, %v1094_v53  ;;  %v2112_v53 = vld [vmem:[%s3259_s30] sm:$0xff]  }
 0x342   : > { %v2119_v55 = vpop.eup %2118  ;;  %v1273_v56 = vpop.f32.mrf.mxu0 }
 0x343   : > { %v1308_v57 = vadd.f32 1.0, %v2119_v55  ;;  %2134 = vrcp.f32 %v1307_v54  ;;  %v1274_v21 = vadd.f32 %v1273_v56, %v1099_v13  ;;  %v2113_v54 = vld [vmem:[%s3259_s30 + $0x8] sm:$0xff]   ;;  %v2114_v55 = vld [vmem:[%s3259_s30 + $0x10] sm:$0xff]   ;;  %v1361_v56 = vpop.permute.xlu1 %1360 }
 0x344   : > { %v2121_v24 = vpop.eup %2120  ;;  %v1275_v29 = vpop.f32.mrf.mxu0  ;;  %2136 = vtanh.f32 %v1270_v35  ;;  %v2115_v35 = vld [vmem:[%s3259_s30 + $0x18] sm:$0xff]  }
 0x345   : > { %v1309_v36 = vadd.f32 1.0, %v2121_v24  ;;  %v1276_v58 = vadd.f32 %v1275_v29, %v1099_v13  ;;  %2138 = vrcp.f32 %v1308_v57 }
 0x346   : > { %v2123_v59 = vpop.eup %2122  ;;  %v1277_v60 = vpop.f32.mrf.mxu0 }
 0x347   : > { %v1310_v61 = vadd.f32 1.0, %v2123_v59  ;;  %v1278_v62 = vadd.f32 %v1277_v60, %v1104_v47  ;;  %2140 = vrcp.f32 %v1309_v36  ;;  %v1366_v59 = vpop.permute.xlu0 %1365 }
 0x348   : > { %v2125_v63 = vpop.eup %2124  ;;  %v1279_v0 = vpop.f32.mrf.mxu0  ;;  %2142 = vtanh.f32 %v1276_v58 }
 0x349   : > { %v2127_v1 = vpop.eup %2126  ;;  %v1311_v14 = vadd.f32 1.0, %v2125_v63  ;;  %2144 = vrcp.f32 %v1310_v61  ;;  %v1280_v16 = vadd.f32 %v1279_v0, %v1104_v47 }
 0x34a   : > { %v2129_v15 = vpop.eup %2128  ;;  %2146 = vtanh.f32 %v1278_v62  ;;  %v1306_v22 = vadd.f32 1.0, %v2127_v1 }
 0x34b   : > { %v1312_v17 = vadd.f32 1.0, %v2129_v15  ;;  %2148 = vrcp.f32 %v1311_v14  ;;  %v1371_v15 = vpop.permute.xlu1 %1370 }
 0x34c   : > { %v2131_v18 = vpop.eup %2130 }
 0x34d   : > { %2150 = vrcp.f32 %v1312_v17  ;;  %v1313_v23 = vadd.f32 1.0, %v2131_v18  ;;  %v2133_v27 = vpop.eup %2132 }
 0x34e   : > { %2152 = vtanh.f32 %v1280_v16 }
 0x34f   : > { %2154 = vrcp.f32 %v1313_v23 }
 0x350   : > { %2156 = vtanh.f32 %v1274_v21  ;;  %v2135_v37 = vpop.eup %2134 }
 0x351   : > { %2158 = vrcp.f32 %v1306_v22  ;;  %v2137_v38 = vpop.eup %2136  ;;  %v1331_v28 = vmul.f32 %v2135_v37, %v2133_v27 }
 0x352   : > { %2160 = vtanh.f32 %v1268_v25  ;;  %v2139_v31 = vpop.eup %2138 }
 0x353   : > { %2162 = vtanh.f32 %v1264_v26 }
 0x354   : > { %v2141_v32 = vpop.eup %2140 }
 0x355   : > { %v2143_v33 = vpop.eup %2142  ;;  %v1333_v45 = vmul.f32 %v2141_v32, %v2137_v38 }
 0x356   : > { %v2145_v34 = vpop.eup %2144 }
 0x357   : > { %v2147_v40 = vpop.eup %2146  ;;  %v1347_v19 = vpack.c.bf16 %v1333_v45, %v1331_v28 }
 0x358   : > { %v2149_v41 = vpop.eup %2148 }
 0x359   : > { %v1335_v11 = vmul.f32 %v2149_v41, %v2143_v33 }
 0x35a   : > { %v2151_v42 = vpop.eup %2150 }
 0x35b   : > { %v2153_v12 = vpop.eup %2152  ;;  %v1336_v43 = vmul.f32 %v2151_v42, %v2147_v40 }
 0x35c   : > { %v2155_v10 = vpop.eup %2154 }
 0x35d   : > { %v2157_v13 = vpop.eup %2156  ;;  %v1337_v44 = vmul.f32 %v2155_v10, %v2153_v12 }
 0x35e   : > { %v2159_v46 = vpop.eup %2158  ;;  %v1334_v47 = vmul.f32 %v2157_v13, %v2145_v34 }
 0x35f   : > { %v2161_v48 = vpop.eup %2160  ;;  %v1349_v49 = vpack.c.bf16 %v1337_v44, %v1335_v11 }
 0x360   : > { %v1348_v50 = vpack.c.bf16 %v1336_v43, %v1334_v47  ;;  %v1332_v51 = vmul.f32 %v2161_v48, %v2139_v31  ;;  %v2163_v52 = vpop.eup %2162 }
 0x361   : > { %1443 = vmatprep.subr.bf16.mxu1 %v1349_v49  ;;  %v1330_v20 = vmul.f32 %v2163_v52, %v2159_v46 }
 0x362   : > { %1444 = vmatpush1.bf16.msra.mxu1 %v1348_v50 }
 0x363   : > { %1445 = vmatprep.subr.bf16.mxu1 %v1347_v19  ;;  %v1346_v30 = vpack.c.bf16 %v1332_v51, %v1330_v20 }
 0x366   : > { %1446 = vmatpush1.bf16.msra.mxu1 %v1346_v30 }
 0x369   : > { %1893 = vmatmul.mubr.msk.bf16.vlgmr.msra.gmra.mxu1 %vm1418_vm0, %v2112_v53 }
 0x36a   : > { %1473 = vmatprep.mubr.bf16.mxu1 %v2439_v39 }
 0x371   : > { %1894 = vmatmul.mubr.msk.bf16.gmra.mxu1 %vm1418_vm0, %v2113_v54 }
 0x372   : > { %1483 = vmatprep.mubr.bf16.mxu1 %v2439_v39 }
 0x379   : > { %1895 = vmatmul.mubr.msk.bf16.gmra.mxu1 %vm1418_vm0, %v2114_v55 }
 0x37a   : > { %1493 = vmatprep.mubr.bf16.mxu1 %v2439_v39 }
 0x381   : > { %1896 = vmatmul.mubr.msk.bf16.gmra.mxu1 %vm1418_vm0, %v2115_v35 }
 0x429   : > { %v1465_v57 = vpop.f32.mrf.mxu1 }
 0x42a   : > { %v1466_v24 = vadd.f32 %v1465_v57, %v1361_v56 }
 0x42b   : > { %v1467_v29 = vpop.f32.mrf.mxu1 }
 0x42c   : > { %v1504_v36 = vadd.f32 %v1466_v24, %v2790_v2  ;;  %v1468_v58 = vadd.f32 %v1467_v29, %v1361_v56 }
 0x42d   : > { %v1469_v60 = vpop.f32.mrf.mxu1 }
 0x42e   : > { %v1512_v61 = vmul.f32 0.70710677, %v1504_v36  ;;  %v1505_v39 = vadd.f32 %v1468_v58, %v2793_v3  ;;  %v1470_v62 = vadd.f32 %v1469_v60, %v1366_v59 }
 0x42f   : > { %v1471_v63 = vpop.f32.mrf.mxu1 }
 0x430   : > { %1520 = vst [vmem:[%s2831_s23] sm:$0xff] %v1512_v61  ;;  %v1513_v0 = vmul.f32 0.70710677, %v1505_v39  ;;  %v1506_v1 = vadd.f32 %v1470_v62, %v2796_v4  ;;  %v1472_v14 = vadd.f32 %v1471_v63, %v1366_v59  ;;  %v1376_v4 = vpop.permute.xlu0 %1375 }
 0x431   : > { %v1475_v16 = vpop.f32.mrf.mxu1 }
 0x432   : > { %1521 = vst [vmem:[%s2831_s23 + $0x8] sm:$0xff] %v1513_v0  ;;  %v1514_v2 = vmul.f32 0.70710677, %v1506_v1  ;;  %v1507_v17 = vadd.f32 %v1472_v14, %v2799_v5  ;;  %v1476_v18 = vadd.f32 %v1475_v16, %v1371_v15 }
 0x433   : > { %v1477_v3 = vpop.f32.mrf.mxu1 }
 0x434   : > { %1522 = vst [vmem:[%s2831_s23 + $0x10] sm:$0xff] %v1514_v2  ;;  %v1515_v21 = vmul.f32 0.70710677, %v1507_v17  ;;  %v1508_v22 = vadd.f32 %v1476_v18, %v2802_v6  ;;  %v1478_v23 = vadd.f32 %v1477_v3, %v1371_v15  ;;  %v1386_v10 = vpop.permute.xlu0 %1385 }
 0x435   : > { %v1479_v25 = vpop.f32.mrf.mxu1 }
 0x436   : > { %1523 = vst [vmem:[%s2831_s23 + $0x18] sm:$0xff] %v1515_v21  ;;  %v1516_v26 = vmul.f32 0.70710677, %v1508_v22  ;;  %v1509_v27 = vadd.f32 %v1478_v23, %v2805_v7  ;;  %v1480_v5 = vadd.f32 %v1479_v25, %v1376_v4  ;;  %v1381_v7 = vpop.permute.xlu1 %1380 }
 0x437   : > { %v1481_v37 = vpop.f32.mrf.mxu1 }
 0x438   : > { %1524 = vst [vmem:[%s2831_s23 + $0x20] sm:$0xff] %v1516_v26  ;;  %v1517_v38 = vmul.f32 0.70710677, %v1509_v27  ;;  %v1510_v31 = vadd.f32 %v1480_v5, %v2808_v8  ;;  %v1482_v6 = vadd.f32 %v1481_v37, %v1376_v4 }
 0x439   : > { %v1485_v32 = vpop.f32.mrf.mxu1 }
 0x43a   : > { %1525 = vst [vmem:[%s2831_s23 + $0x28] sm:$0xff] %v1517_v38  ;;  %v1518_v33 = vmul.f32 0.70710677, %v1510_v31  ;;  %v1511_v34 = vadd.f32 %v1482_v6, %v2811_v9  ;;  %v1486_v41 = vadd.f32 %v1485_v32, %v1381_v7 }
 0x43b   : > { %v1487_v40 = vpop.f32.mrf.mxu1 }
 0x43c   : > { %1526 = vst [vmem:[%s2831_s23 + $0x30] sm:$0xff] %v1518_v33  ;;  %v1519_v8 = vmul.f32 0.70710677, %v1511_v34  ;;  %v1488_v42 = vadd.f32 %v1487_v40, %v1381_v7 }
 0x43d   : > { %v1489_v12 = vpop.f32.mrf.mxu1 }
 0x43e   : > { %1527 = vst [vmem:[%s2831_s23 + $0x38] sm:$0xff] %v1519_v8  ;;  %v1944_v9 = vpack.c.bf16 %v1488_v42, %v1486_v41 }
 0x43f   : > { %v1491_v43 = vpop.f32.mrf.mxu1 }
 0x440   : > { %2255 = shalt.err (!%p2252_p4)
}
 0x441   : > { %s2256_s23 = scalar_lea.hbm %s3036_s8, 1024  ;;  %s2260_s16 = scalar_lea.hbm %s3262_s4, 8192 }
 0x442   : > { %p2257_p8 = scmp.ne.s32.totalorder %s3036_s8, %s2256_s23  ;;  %p2261_p6 = scmp.lt.s32.totalorder %s3036_s8, %s3262_s4 }
 0x443   : > { %p2262_p13 = scmp.lt.s32.totalorder %s2260_s16, %s2256_s23 }
 0x444   : > { %p2258_p2 = pnand %p2257_p8, %p2676_p7 }
 0x445   : > { %p2263_p1 = por %p2262_p13, %p2261_p6 }
 0x446   : > { %p2259_p5 = pneg %p2258_p2 }
 0x448   : > { %p2264_p0 = pnand %p2263_p1, %p2259_p5 }
 0x44a   : > { %2267 = shalt.err (!%p2264_p0)
}
 0x44b   : > { %s2441_s7 = smov 256   ;;  %s2442_s17 = smov 1024   ;;  %1552 = vst [vmem:[%s2833_s9] sm:$0xff] %v1944_v9  ;;  %v1490_v13 = vadd.f32 %v1489_v12, %v1386_v10  ;;  %v1492_v11 = vadd.f32 %v1491_v43, %v1386_v10  ;;  %v1495_v44 = vpop.f32.mrf.mxu1  ;;  %v1391_v46 = vpop.permute.xlu1 %1390 }
 0x44c   : > { %s2443_s29 = smov 16   ;;  %v1496_v48 = vadd.f32 %v1495_v44, %v1391_v46  ;;  %s1908_s6 = sshll.u32 %s3023_s24, 6  ;;  %v1396_v51 = vpop.permute.xlu0 %1395 }
 0x44d   : > { %1954 = dma.vmem_to_hbm [thread:$0]  (%p2676_p7), %s3038_s13, 1024, %s3036_s8, %s1557_s14, %s2441_s7, %s2442_s17, %s2443_s29   ;;  %v1945_v45 = vpack.c.bf16 %v1492_v11, %v1490_v13  ;;  %v1497_v47 = vpop.f32.mrf.mxu1 }
 0x44e   : > { %v1498_v49 = vadd.f32 %v1497_v47, %v1391_v46  ;;  %s1595_s0 = sshll.u32 %s2833_s9, 4  ;;  %s3264_s14 = sld [smem:[#allocation47_spill]]  ;;  %s3075_s0 = int_to_ptr.vmem [resolvable:$true] %s1595_s0 }
 0x44f   : > { %1553 = vst [vmem:[%s2833_s9 + $0x8] sm:$0xff] %v1945_v45  ;;  %v1499_v28 = vpop.f32.mrf.mxu1  ;;  %s1562_s24 = scalar_lea.sflag [#allocation13], %s2751_s28  ;;  %s2268_s15 = scalar_lea.vmem %s3075_s0, 512 }
 0x450   : > { %v1946_v50 = vpack.c.bf16 %v1498_v49, %v1496_v48  ;;  %v1500_v19 = vadd.f32 %v1499_v28, %v1396_v51  ;;  %p2269_p10 = scmp.ne.s32.totalorder %s3075_s0, %s2268_s15  ;;  %s2444_s23 = smov [#allocation12]  }
 0x451   : > { %v1501_v52 = vpop.f32.mrf.mxu1  ;;  %s2272_s19 = sshll.u32 %s2444_s23, 4  ;;  %s2273_s19 = int_to_ptr.vmem [resolvable:$false] %s2272_s19 }
 0x452   : > { %1554 = vst [vmem:[%s2833_s9 + $0x10] sm:$0xff] %v1946_v50  ;;  %v1502_v20 = vadd.f32 %v1501_v52, %v1396_v51  ;;  %p2270_p3 = pnand %p2269_p10, %p2676_p7  ;;  %s2274_s22 = scalar_lea.vmem %s2273_s19, 1024 }
 0x453   : > { %p2275_p11 = scmp.lt.s32.totalorder %s3075_s0, %s2273_s19  ;;  %p2276_p4 = scmp.lt.s32.totalorder %s2274_s22, %s2268_s15 }
 0x454   : > { %s3265_s5 = smov %s3264_s14  ;;  %s3073_s21 = scalar_lea.hbm %s3264_s14, %s1908_s6  ;;  %v1947_v30 = vpack.c.bf16 %v1502_v20, %v1500_v19 }
 0x455   : > { %p2271_p12 = pneg %p2270_p3  ;;  %p2277_p8 = por %p2276_p4, %p2275_p11 }
 0x456   : > { %1555 = vst [vmem:[%s2833_s9 + $0x18] sm:$0xff] %v1947_v30 }
 0x457   : > { %p2278_p2 = pnand %p2277_p8, %p2271_p12 }
 0x459   : > { %2281 = shalt.err (!%p2278_p2)
}
 0x45a   : > { %s2282_s9 = scalar_lea.hbm %s3073_s21, 512  ;;  %s2286_s10 = scalar_lea.hbm %s3265_s5, 4096 }
 0x45b   : > { %p2283_p5 = scmp.ne.s32.totalorder %s3073_s21, %s2282_s9  ;;  %p2287_p1 = scmp.lt.s32.totalorder %s3073_s21, %s3265_s5 }
 0x45c   : > { %p2288_p0 = scmp.lt.s32.totalorder %s2286_s10, %s2282_s9 }
 0x45d   : > { %p2284_p6 = pnand %p2283_p5, %p2676_p7 }
 0x45e   : > { %p2289_p10 = por %p2288_p0, %p2287_p1 }
 0x45f   : > { %p2285_p13 = pneg %p2284_p6 }
 0x461   : > { %p2290_p3 = pnand %p2289_p10, %p2285_p13 }
 0x463   : > { %2293 = shalt.err (!%p2290_p3)
}
 0x464   : > { %s2445_s29 = smov 128   ;;  %s2446_s6 = smov 512  }
 0x465   : > { %s2447_s13 = smov 8  }
 0x466   : > { %1955 = dma.vmem_to_hbm [thread:$0]  (%p2676_p7), %s3075_s0, 512, %s3073_s21, %s1562_s24, %s2445_s29, %s2446_s6, %s2447_s13  }
 0x467 PF: > { %s3266_s8 = sld [smem:[#allocation23_spill]]  ;;  %p1965_p12 = scmp.ge.s32.totalorder %s2424_s26, 2 }
 0x469   : > { %p1959_p11 = pnand %p1965_p12, %p2683_p9 }
 0x46b   : > { %p1960_p4 = pneg %p1959_p11 }
 0x46d   : > { %s1610_s15 = sand.u32 1, %s3266_s8  }
 0x46e   : > { %s1611_s23 = scalar_lea.sflag [#allocation6], %s1610_s15 }
 0x46f   : > { %2363 = dma.done.wait (%p1960_p4), %s1611_s23, 1024  }
 0x470   : > { %2365 = vsyncadd (%p1960_p4), %s1611_s23, 4294966272  ;;  %s1620_s19 = scalar_lea.sflag [#allocation13], %s1610_s15 }
 0x471   : > { %2367 = dma.done.wait (%p1960_p4), %s1620_s19, 512  }
 0x472   : > { %2369 = vsyncadd (%p1960_p4), %s1620_s19, 4294966784  ;;  %s33_s26 = sadd.s32 1, %s2424_s26   ;;  %s3269_s13 = sld [smem:[#allocation19_spill]] }
 0x473   : > { %p3106_p8 = scmp.ge.s32.totalorder %s33_s26, 10   ;;  %s3270_s14 = sld [smem:[#allocation20_spill]] }
 0x474   : > { %s3271_s15 = sld [smem:[#allocation38_spill]]  ;;  %s3280_s19 = smov %s2400_s20 }
 0x475   : > { %s3272_s16 = sld [smem:[#allocation21_spill]]  ;;  %s3282_s23 = smov %s2420_s25 }
 0x476   : > { %s3273_s17 = sld [smem:[#allocation22_spill]] }
 0x477   : > { %s3274_s18 = sld [smem:[#allocation34_spill]] }
 0x478   : > { %s3275_s0 = sld [smem:[#allocation24_spill]] }
 0x479   : > { %s3276_s21 = sld [smem:[#allocation32_spill]] }
 0x47a   : > { %s3277_s22 = sld [smem:[#allocation27_spill]] }
 0x47b   : > { %s3278_s24 = sld [smem:[#allocation29_spill]] }
 0x47c   : > { %s3279_s9 = sld [smem:[#allocation30_spill]] }
 0x47e   : > { %s3281_s20 = smov %s3275_s0  ;;  %32 = sbr.rel (!%p3106_p8) target bundleno = 24 (0x18), region = 199 }
 0x482   : > { %s3283_s25 = smov %s3279_s9 }
 0x483   :  { %1625 = vsyncpa [#allocation5], 1 }
 0x484   :  { %1627 = vsyncpa [#allocation5 + $0x1], 1 }
 0x485   :  { %1628 = vsyncpa [#allocation8], 1 }
 0x486   :  { %1630 = vsyncpa [#allocation8 + $0x1], 1 }
 0x487   :  { %1631 = vsyncpa [#allocation6], 1 }
 0x488   :  { %1633 = vsyncpa [#allocation6 + $0x1], 1 }
 0x489   :  { %1634 = vsyncpa [#allocation13], 1 }
 0x48a   :  { %1636 = vsyncpa [#allocation13 + $0x1], 1 }

</bundles_post_ra>
